<compile_context>
chip_gen: v7x
topology: tpu7x:2x2x1
jax: 0.10.0
libtpu: 0.0.40
codegen_flags: <defaults>
</compile_context>

<pallas_src>
import jax
import jax.numpy as jnp
import numpy as np
from jax import lax
from jax.experimental import pallas as pl
from jax.experimental.pallas import tpu as pltpu


# -----------------------------------------------------------------------------
# Kernel: one (batch, query-block) step.
# -----------------------------------------------------------------------------
def _nonlocal_kernel(x_ref, wq_ref, bq_ref, wkv_ref, bkv_ref, wout_ref, bout_ref,
                     o_ref, kv_ref):
    # x_ref:   (1, c, hw) bf16  -- K/V/query source, resident across query blocks
    # wq:  (ip, c)  bf16   bq:  (ip, 1)  f32     ip = inter padded (sublane/MXU aligned)
    # wkv: (2ip, c) bf16   bkv: (2ip, 1) f32     rows [0:ip) = phi, rows [ip:2ip) = g
    # wout:(c, ip)  bf16   bout:(c, 1)  f32
    # o_ref:  (1, c, tq) f32
    # kv_ref: (2ip, hw)  bf16 scratch -- projected keys/values (valid for whole batch)
    ip = wq_ref.shape[0]
    tq = o_ref.shape[2]
    qi = pl.program_id(1)

    # ---- K/V projection: once per batch (hoisted out of the query loop) -----
    @pl.when(qi == 0)
    def _():
        kv = jnp.dot(wkv_ref[...], x_ref[0],
                     preferred_element_type=jnp.float32) + bkv_ref[...]   # (2ip, hw) f32
        kv_ref[...] = kv.astype(kv_ref.dtype)

    # ---- queries sliced from the resident block (no second HBM stream) ------
    start = qi * tq
    if tq % 128 == 0:
        start = pl.multiple_of(start, 128)
    x_q = x_ref[0, :, pl.ds(start, tq)]                                   # (c, tq) bf16

    # 1x1-conv query projection (MXU, bf16 operands, f32 accumulation).
    theta = jnp.dot(wq_ref[...], x_q,
                    preferred_element_type=jnp.float32) + bq_ref[...]     # (ip, tq) f32
    theta = theta.astype(jnp.bfloat16)

    phi = kv_ref[:ip, :]                                                  # (ip, hw) bf16
    g = kv_ref[ip:, :]                                                    # (ip, hw) bf16

    # Scores: f[q, k] = sum_i theta[i, q] * phi[i, k]  (contract dim 0; no .T)
    f = lax.dot_general(theta, phi, (((0,), (0,)), ((), ())),
                        preferred_element_type=jnp.float32)               # (tq, hw) f32

    # Exact row softmax, normalization deferred past the PV matmul.
    m = jnp.max(f, axis=-1, keepdims=True)
    e = jnp.exp(f - m)                                                    # unnormalized
    r = pl.reciprocal(jnp.sum(e, axis=-1, keepdims=True), approx=True)    # (tq, 1) f32

    # y_t[q, i] = sum_k e[q, k] * g[i, k]  (contract last dims; no .T)
    y_t = lax.dot_general(e.astype(jnp.bfloat16), g, (((1,), (1,)), ((), ())),
                          preferred_element_type=jnp.float32)             # (tq, ip) f32
    y_t = (y_t * r).astype(jnp.bfloat16)                                  # post-normalize

    # Output 1x1 conv + residual: out[c, q] = sum_i wout[c, i] * y_t[q, i]
    out = lax.dot_general(wout_ref[...], y_t, (((1,), (1,)), ((), ())),
                          preferred_element_type=jnp.float32) + bout_ref[...]  # (c, tq)
    o_ref[0] = (out + x_q.astype(jnp.float32)).astype(o_ref.dtype)


# -----------------------------------------------------------------------------
# Host-side, once-per-model parameter packing (outside the jitted call path).
# -----------------------------------------------------------------------------
def pack_params(w_theta, b_theta, w_phi, b_phi, w_g, b_g, w_out, b_out):
    inter, c = int(w_theta.shape[0]), int(w_theta.shape[1])
    # bf16 packs 16 rows per sublane tile; production channel counts round up to
    # 128 so the MXU contraction dim fills the 256x256 array (zero rows are inert).
    mult = 128 if inter >= 64 else 16
    ip = ((inter + mult - 1) // mult) * mult

    wdt = jnp.bfloat16
    wq = jnp.zeros((ip, c), wdt).at[:inter].set(w_theta[:, :, 0, 0].astype(wdt))
    bq = jnp.zeros((ip, 1), jnp.float32).at[:inter, 0].set(b_theta)

    wkv = jnp.zeros((2 * ip, c), wdt)
    wkv = wkv.at[:inter].set(w_phi[:, :, 0, 0].astype(wdt))
    wkv = wkv.at[ip:ip + inter].set(w_g[:, :, 0, 0].astype(wdt))
    bkv = jnp.zeros((2 * ip, 1), jnp.float32)
    bkv = bkv.at[:inter, 0].set(b_phi).at[ip:ip + inter, 0].set(b_g)

    wout = jnp.zeros((c, ip), wdt).at[:, :inter].set(w_out[:, :, 0, 0].astype(wdt))
    bout = b_out.reshape(c, 1).astype(jnp.float32)
    return wq, bq, wkv, bkv, wout, bout


def _pick_tq(hw):
    # Keep (tq, hw) f32 score temporaries modest for large hw (v5e / v7x budgets).
    cands = (256, 128) if hw >= 4096 else (512, 256, 128)
    for cand in cands:
        if hw % cand == 0:
            return cand
    return hw  # awkward hw: single query block (full attention row resident)


def _vmem_budget_bytes(c, hw, tq, ip):
    x_block = 2 * (c * hw * 2)        # bf16 K/V source block, double-buffered
    out_block = 2 * (c * tq * 4)      # f32 output block, double-buffered
    kv_scr = 2 * ip * hw * 2          # bf16 projected K/V scratch
    scores = 3 * tq * hw * 4          # f, e and the bf16-cast temporary
    weights = 4 * ip * c * 2 + (4 * ip + c) * 4
    est = int((x_block + out_block + kv_scr + scores + weights) * 1.25)
    return min(56 * 1024 * 1024, max(32 * 1024 * 1024, est))


@jax.jit
def nonlocal_forward(x_nchw, params):
    wq, bq, wkv, bkv, wout, bout = params
    b, c, h, w = x_nchw.shape
    hw = h * w
    ip = wq.shape[0]
    # Channel-major (b, c, hw): NCHW <-> (b, c, hw) is a free reshape; hw sits on
    # the lane axis so loads / stores are lane-dense. bf16 feeds the MXU directly.
    x = x_nchw.reshape(b, c, hw).astype(jnp.bfloat16)

    tq = _pick_tq(hw)
    assert hw % tq == 0, "query tile must evenly divide h*w"
    n_q = hw // tq

    out = pl.pallas_call(
        _nonlocal_kernel,
        out_shape=jax.ShapeDtypeStruct((b, c, hw), jnp.float32),
        grid=(b, n_q),
        in_specs=[
            pl.BlockSpec((1, c, hw), lambda bi, qi: (bi, 0, 0)),   # x: K/V + queries
            pl.BlockSpec(wq.shape, lambda bi, qi: (0, 0)),
            pl.BlockSpec(bq.shape, lambda bi, qi: (0, 0)),
            pl.BlockSpec(wkv.shape, lambda bi, qi: (0, 0)),
            pl.BlockSpec(bkv.shape, lambda bi, qi: (0, 0)),
            pl.BlockSpec(wout.shape, lambda bi, qi: (0, 0)),
            pl.BlockSpec(bout.shape, lambda bi, qi: (0, 0)),
        ],
        out_specs=pl.BlockSpec((1, c, tq), lambda bi, qi: (bi, 0, qi)),
        scratch_shapes=[pltpu.VMEM((2 * ip, hw), jnp.bfloat16)],
        compiler_params=pltpu.CompilerParams(
            # qi must run sequentially per batch (kv scratch is filled at qi == 0);
            # the batch axis shards across v7x's two TensorCores.
            dimension_semantics=("parallel", "arbitrary"),
            vmem_limit_bytes=_vmem_budget_bytes(c, hw, tq, ip)),
    )(x, wq, bq, wkv, bkv, wout, bout)

    return out.reshape(b, c, h, w)


# -----------------------------------------------------------------------------
# Pure-JAX reference mirroring the PyTorch forward exactly.
# -----------------------------------------------------------------------------
def nonlocal_reference(x, params):
    w_theta, b_theta, w_phi, b_phi, w_g, b_g, w_out, b_out = params
    b, c, h, w = x.shape
    hw = h * w
    inter = w_theta.shape[0]

    def conv1x1(inp, wt, bias):
        return jnp.einsum("bchw,oc->bohw", inp, wt[:, :, 0, 0]) + bias[None, :, None, None]

    g_x = conv1x1(x, w_g, b_g).reshape(b, inter, hw).transpose(0, 2, 1)           # (b, hw, i)
    theta_x = conv1x1(x, w_theta, b_theta).reshape(b, inter, hw).transpose(0, 2, 1)
    phi_x = conv1x1(x, w_phi, b_phi).reshape(b, inter, hw)                         # (b, i, hw)
    f = jnp.einsum("bqi,bik->bqk", theta_x, phi_x)
    p = jax.nn.softmax(f, axis=-1)
    y = jnp.einsum("bqk,bki->bqi", p, g_x)
    y = y.transpose(0, 2, 1).reshape(b, inter, h, w)
    y = conv1x1(y, w_out, b_out)
    return y + x


if __name__ == "__main__":
    B, C, H, W = 2, 4, 16, 16
    INTER = C // 2

    key = jax.random.PRNGKey(0)
    ks = jax.random.split(key, 9)

    def bf16_exact(a):
        # Keep test data exactly representable in bf16 so the comparison isn't
        # dominated by the MXU's reduced-precision passes (kernel & reference).
        return a.astype(jnp.bfloat16).astype(jnp.float32)

    sc_qk = 0.25 / np.sqrt(C)     # modest scale -> O(1) softmax logits
    sc_v = 1.0 / np.sqrt(C)
    sc_o = 1.0 / np.sqrt(INTER)

    x = bf16_exact(jax.random.normal(ks[0], (B, C, H, W), jnp.float32))
    w_g = bf16_exact(sc_v * jax.random.normal(ks[1], (INTER, C, 1, 1), jnp.float32))
    b_g = bf16_exact(0.05 * jax.random.normal(ks[2], (INTER,), jnp.float32))
    w_theta = bf16_exact(sc_qk * jax.random.normal(ks[3], (INTER, C, 1, 1), jnp.float32))
    b_theta = bf16_exact(0.05 * jax.random.normal(ks[4], (INTER,), jnp.float32))
    w_phi = bf16_exact(sc_qk * jax.random.normal(ks[5], (INTER, C, 1, 1), jnp.float32))
    b_phi = bf16_exact(0.05 * jax.random.normal(ks[6], (INTER,), jnp.float32))
    w_out = bf16_exact(sc_o * jax.random.normal(ks[7], (C, INTER, 1, 1), jnp.float32))
    b_out = bf16_exact(0.05 * jax.random.normal(ks[8], (C,), jnp.float32))

    packed = pack_params(w_theta, b_theta, w_phi, b_phi, w_g, b_g, w_out, b_out)

    out = jax.block_until_ready(nonlocal_forward(x, packed))
    ref = jax.block_until_ready(
        nonlocal_reference(x, (w_theta, b_theta, w_phi, b_phi, w_g, b_g, w_out, b_out)))

    # Tolerance covers bf16 MXU operands in the kernel vs XLA's default
    # reduced-precision f32 matmuls in the reference; structural bugs would be O(1).
    np.testing.assert_allclose(np.asarray(out), np.asarray(ref), rtol=2e-2, atol=2e-2)
    print("KERNEL_OK")
</pallas_src>

<mosaic_0001>
module attributes {stable_mosaic.version = 11 : i64} {
  func.func @_nonlocal_kernel(%arg0: i32, %arg1: i32, %arg2: memref<1x4x256xbf16, #tpu.memory_space<vmem>>, %arg3: memref<16x4xbf16, #tpu.memory_space<vmem>>, %arg4: memref<16x1xf32, #tpu.memory_space<vmem>>, %arg5: memref<32x4xbf16, #tpu.memory_space<vmem>>, %arg6: memref<32x1xf32, #tpu.memory_space<vmem>>, %arg7: memref<4x16xbf16, #tpu.memory_space<vmem>>, %arg8: memref<4x1xf32, #tpu.memory_space<vmem>>, %arg9: memref<1x4x256xf32, #tpu.memory_space<vmem>>, %arg10: memref<32x256xbf16, #tpu.memory_space<vmem>>) attributes {dimension_semantics = [#tpu.dimension_semantics<parallel>, #tpu.dimension_semantics<arbitrary>], iteration_bounds = array<i64: 2, 1>, scalar_prefetch = 0 : i64, scratch_operands = 1 : i64, tpu.core_type = #tpu.core_type<tc>, window_params = [{transform_indices = @transform_0, window_bounds = array<i64: 1, 4, 256>}, {pipeline_mode = #tpu.pipeline_mode<synchronous>, transform_indices = @transform_1, window_bounds = array<i64: 16, 4>}, {pipeline_mode = #tpu.pipeline_mode<synchronous>, transform_indices = @transform_2, window_bounds = array<i64: 16, 1>}, {pipeline_mode = #tpu.pipeline_mode<synchronous>, transform_indices = @transform_3, window_bounds = array<i64: 32, 4>}, {pipeline_mode = #tpu.pipeline_mode<synchronous>, transform_indices = @transform_4, window_bounds = array<i64: 32, 1>}, {pipeline_mode = #tpu.pipeline_mode<synchronous>, transform_indices = @transform_5, window_bounds = array<i64: 4, 16>}, {pipeline_mode = #tpu.pipeline_mode<synchronous>, transform_indices = @transform_6, window_bounds = array<i64: 4, 1>}, {transform_indices = @transform_7, window_bounds = array<i64: 1, 4, 256>}]} {
    %c0_i32 = arith.constant 0 : i32
    %0 = arith.cmpi eq, %arg1, %c0_i32 : i32
    %1 = arith.extui %0 : i1 to i32
    %c0_i32_0 = arith.constant 0 : i32
    %2 = arith.cmpi ne, %1, %c0_i32_0 : i32
    scf.if %2 {
      %c0_21 = arith.constant 0 : index
      %c0_22 = arith.constant 0 : index
      %40 = vector.load %arg5[%c0_21, %c0_22] : memref<32x4xbf16, #tpu.memory_space<vmem>>, vector<32x4xbf16>
      %c0_23 = arith.constant 0 : index
      %c0_24 = arith.constant 0 : index
      %c0_25 = arith.constant 0 : index
      %41 = vector.load %arg2[%c0_23, %c0_24, %c0_25] : memref<1x4x256xbf16, #tpu.memory_space<vmem>>, vector<1x4x256xbf16>
      %42 = vector.shape_cast %41 : vector<1x4x256xbf16> to vector<4x256xbf16>
      %cst_26 = arith.constant dense<0.000000e+00> : vector<32x256xf32>
      %43 = tpu.matmul %40, %42, %cst_26 {dimension_numbers = #tpu.dot_dimension_numbers<[1], [0], [0], [1], [0, 0, 1, 1], [], []>} : vector<32x4xbf16>, vector<4x256xbf16>, vector<32x256xf32> -> vector<32x256xf32>
      %c0_27 = arith.constant 0 : index
      %c0_28 = arith.constant 0 : index
      %44 = vector.load %arg6[%c0_27, %c0_28] : memref<32x1xf32, #tpu.memory_space<vmem>>, vector<32x1xf32>
      %45 = vector.broadcast %44 : vector<32x1xf32> to vector<32x256xf32>
      %46 = arith.addf %43, %45 : vector<32x256xf32>
      %47 = arith.truncf %46 : vector<32x256xf32> to vector<32x256xbf16>
      %c0_29 = arith.constant 0 : index
      %c0_30 = arith.constant 0 : index
      %48 = vector.load %arg10[%c0_29, %c0_30] : memref<32x256xbf16, #tpu.memory_space<vmem>>, vector<32x256xbf16>
      tpu.vector_store %arg10[%c0_29, %c0_30], %47 {strides = array<i32>} : memref<32x256xbf16, #tpu.memory_space<vmem>>, vector<32x256xbf16>,
    } else {
    }
    %c256_i32 = arith.constant 256 : i32
    %3 = arith.muli %arg1, %c256_i32 : i32
    %4 = tpu.assume_multiple %3, 128 : i32
    %c0 = arith.constant 0 : index
    %c0_1 = arith.constant 0 : index
    %5 = arith.index_cast %4 : i32 to index
    %6 = vector.load %arg2[%c0, %c0_1, %5] : memref<1x4x256xbf16, #tpu.memory_space<vmem>>, vector<1x4x256xbf16>
    %7 = vector.shape_cast %6 : vector<1x4x256xbf16> to vector<4x256xbf16>
    %c0_2 = arith.constant 0 : index
    %c0_3 = arith.constant 0 : index
    %8 = vector.load %arg3[%c0_2, %c0_3] : memref<16x4xbf16, #tpu.memory_space<vmem>>, vector<16x4xbf16>
    %cst = arith.constant dense<0.000000e+00> : vector<16x256xf32>
    %9 = tpu.matmul %8, %7, %cst {dimension_numbers = #tpu.dot_dimension_numbers<[1], [0], [0], [1], [0, 0, 1, 1], [], []>} : vector<16x4xbf16>, vector<4x256xbf16>, vector<16x256xf32> -> vector<16x256xf32>
    %c0_4 = arith.constant 0 : index
    %c0_5 = arith.constant 0 : index
    %10 = vector.load %arg4[%c0_4, %c0_5] : memref<16x1xf32, #tpu.memory_space<vmem>>, vector<16x1xf32>
    %11 = vector.broadcast %10 : vector<16x1xf32> to vector<16x256xf32>
    %12 = arith.addf %9, %11 : vector<16x256xf32>
    %13 = arith.truncf %12 : vector<16x256xf32> to vector<16x256xbf16>
    %c0_6 = arith.constant 0 : index
    %c0_7 = arith.constant 0 : index
    %14 = vector.load %arg10[%c0_6, %c0_7] : memref<32x256xbf16, #tpu.memory_space<vmem>>, vector<16x256xbf16>
    %c16 = arith.constant 16 : index
    %c0_8 = arith.constant 0 : index
    %15 = vector.load %arg10[%c16, %c0_8] : memref<32x256xbf16, #tpu.memory_space<vmem>>, vector<16x256xbf16>
    %cst_9 = arith.constant dense<0.000000e+00> : vector<256x256xf32>
    %16 = tpu.matmul %13, %14, %cst_9 {dimension_numbers = #tpu.dot_dimension_numbers<[0], [0], [1], [1], [0, 1, 1, 1], [], []>} : vector<16x256xbf16>, vector<16x256xbf16>, vector<256x256xf32> -> vector<256x256xf32>
    %cst_10 = arith.constant dense<0xFF800000> : vector<256xf32>
    %17 = vector.multi_reduction <maximumf>, %16, %cst_10 [1] : vector<256x256xf32> to vector<256xf32>
    %18 = vector.shape_cast %17 : vector<256xf32> to vector<256x1xf32>
    %19 = vector.broadcast %18 : vector<256x1xf32> to vector<256x256xf32>
    %20 = arith.subf %16, %19 : vector<256x256xf32>
    %21 = math.exp %20 : vector<256x256xf32>
    %cst_11 = arith.constant dense<0.000000e+00> : vector<256xf32>
    %22 = vector.multi_reduction <add>, %21, %cst_11 [1] : vector<256x256xf32> to vector<256xf32>
    %23 = vector.shape_cast %22 : vector<256xf32> to vector<256x1xf32>
    %24 = tpu.reciprocal %23 {approx = true} : vector<256x1xf32> -> vector<256x1xf32>
    %25 = arith.truncf %21 : vector<256x256xf32> to vector<256x256xbf16>
    %cst_12 = arith.constant dense<0.000000e+00> : vector<256x16xf32>
    %26 = tpu.matmul %25, %15, %cst_12 {dimension_numbers = #tpu.dot_dimension_numbers<[1], [1], [0], [0], [0, 0, 1, 0], [], []>} : vector<256x256xbf16>, vector<16x256xbf16>, vector<256x16xf32> -> vector<256x16xf32>
    %27 = vector.broadcast %24 : vector<256x1xf32> to vector<256x16xf32>
    %28 = arith.mulf %26, %27 : vector<256x16xf32>
    %29 = arith.truncf %28 : vector<256x16xf32> to vector<256x16xbf16>
    %c0_13 = arith.constant 0 : index
    %c0_14 = arith.constant 0 : index
    %30 = vector.load %arg7[%c0_13, %c0_14] : memref<4x16xbf16, #tpu.memory_space<vmem>>, vector<4x16xbf16>
    %cst_15 = arith.constant dense<0.000000e+00> : vector<4x256xf32>
    %31 = tpu.matmul %30, %29, %cst_15 {dimension_numbers = #tpu.dot_dimension_numbers<[1], [1], [0], [0], [0, 0, 1, 0], [], []>} : vector<4x16xbf16>, vector<256x16xbf16>, vector<4x256xf32> -> vector<4x256xf32>
    %c0_16 = arith.constant 0 : index
    %c0_17 = arith.constant 0 : index
    %32 = vector.load %arg8[%c0_16, %c0_17] : memref<4x1xf32, #tpu.memory_space<vmem>>, vector<4x1xf32>
    %33 = vector.broadcast %32 : vector<4x1xf32> to vector<4x256xf32>
    %34 = arith.addf %31, %33 : vector<4x256xf32>
    %35 = arith.extf %7 : vector<4x256xbf16> to vector<4x256xf32>
    %36 = arith.addf %34, %35 : vector<4x256xf32>
    %c0_18 = arith.constant 0 : index
    %c0_19 = arith.constant 0 : index
    %c0_20 = arith.constant 0 : index
    %37 = vector.load %arg9[%c0_18, %c0_19, %c0_20] : memref<1x4x256xf32, #tpu.memory_space<vmem>>, vector<1x4x256xf32>
    %38 = vector.shape_cast %37 : vector<1x4x256xf32> to vector<4x256xf32>
    %39 = vector.shape_cast %36 : vector<4x256xf32> to vector<1x4x256xf32>
    tpu.vector_store %arg9[%c0_18, %c0_19, %c0_20], %39 {strides = array<i32>} : memref<1x4x256xf32, #tpu.memory_space<vmem>>, vector<1x4x256xf32>,
    return
  }
  func.func @transform_0(%arg0: i32, %arg1: i32) -> (i32, i32, i32) {
    %c0_i32 = arith.constant 0 : i32
    %c0_i32_0 = arith.constant 0 : i32
    %c0_i32_1 = arith.constant 0 : i32
    return %arg0, %c0_i32, %c0_i32_0 : i32, i32, i32
  }
  func.func @transform_1(%arg0: i32, %arg1: i32) -> (i32, i32) {
    %c0_i32 = arith.constant 0 : i32
    %c0_i32_0 = arith.constant 0 : i32
    %c0_i32_1 = arith.constant 0 : i32
    return %c0_i32, %c0_i32_0 : i32, i32
  }
  func.func @transform_2(%arg0: i32, %arg1: i32) -> (i32, i32) {
    %c0_i32 = arith.constant 0 : i32
    %c0_i32_0 = arith.constant 0 : i32
    %c0_i32_1 = arith.constant 0 : i32
    return %c0_i32, %c0_i32_0 : i32, i32
  }
  func.func @transform_3(%arg0: i32, %arg1: i32) -> (i32, i32) {
    %c0_i32 = arith.constant 0 : i32
    %c0_i32_0 = arith.constant 0 : i32
    %c0_i32_1 = arith.constant 0 : i32
    return %c0_i32, %c0_i32_0 : i32, i32
  }
  func.func @transform_4(%arg0: i32, %arg1: i32) -> (i32, i32) {
    %c0_i32 = arith.constant 0 : i32
    %c0_i32_0 = arith.constant 0 : i32
    %c0_i32_1 = arith.constant 0 : i32
    return %c0_i32, %c0_i32_0 : i32, i32
  }
  func.func @transform_5(%arg0: i32, %arg1: i32) -> (i32, i32) {
    %c0_i32 = arith.constant 0 : i32
    %c0_i32_0 = arith.constant 0 : i32
    %c0_i32_1 = arith.constant 0 : i32
    return %c0_i32, %c0_i32_0 : i32, i32
  }
  func.func @transform_6(%arg0: i32, %arg1: i32) -> (i32, i32) {
    %c0_i32 = arith.constant 0 : i32
    %c0_i32_0 = arith.constant 0 : i32
    %c0_i32_1 = arith.constant 0 : i32
    return %c0_i32, %c0_i32_0 : i32, i32
  }
  func.func @transform_7(%arg0: i32, %arg1: i32) -> (i32, i32, i32) {
    %c0_i32 = arith.constant 0 : i32
    %c0_i32_0 = arith.constant 0 : i32
    return %arg0, %c0_i32, %arg1 : i32, i32, i32
  }
}

</mosaic_0001>

<bundles_post_ra>
// kernel: nonlocal_forward.1
= control target key start
LH: loop header
LB: loop body
LE: loop exit
PB: predicated region body
PF: predicated region fallthrough
CT: control target
= control target key end

     0   :  { %s2003_s24 = smov 0   ;;  %s2005_s25 = smov 0   ;;  %s2769_s0 = inlined_call_operand.vmem [shape: bf16[2,4,256], index: 0, kind: input, shape index: {}]   ;;  %s2770_s1 = inlined_call_operand.vmem [shape: bf16[16,4], index: 1, kind: input, shape index: {}]   ;;  %s2771_s2 = inlined_call_operand.vmem [shape: f32[16,1], index: 2, kind: input, shape index: {}]   ;;  %s2772_s3 = inlined_call_operand.vmem [shape: bf16[32,4], index: 3, kind: input, shape index: {}]   ;;  %s2773_s4 = inlined_call_operand.vmem [shape: f32[32,1], index: 4, kind: input, shape index: {}]   ;;  %s2774_s5 = inlined_call_operand.vmem [shape: bf16[4,16], index: 5, kind: input, shape index: {}]   ;;  %s2775_s6 = inlined_call_operand.vmem [shape: f32[4,1], index: 6, kind: input, shape index: {}]   ;;  %s2776_s7 = inlined_call_operand.vmem [shape: f32[2,4,256], index: 7, kind: output, shape index: {}]  }
   0x1   :  { %s2007_s26 = smov 0  }
   0x2 LB: > { %s29_s27 = sadd.s32 1, %s1956_s25  ;;  %p1652_p0 = scmp.ge.s32.totalorder %s1960_s26, 1  ;;  %s1960_s26 = sphi %s2007_s26, %s17_s26   ;;  %s1956_s25 = sphi %s2005_s25, %s2829_s25   ;;  %s1952_s24 = sphi %s2003_s24, %s2828_s24  }
   0x3   : > { %p31_p1 = scmp.ge.s32.totalorder %s29_s27, 2  ;;  %p251_p2 = scmp.lt.s32.totalorder %s1960_s26, 3 }
   0x5   : > { %s2831_s27 = smov (%p31_p1, %s29_s27), 0  ;;  %p252_p3 = pnand %p1652_p0, %p251_p2 }
   0x7   : > { %255 = sbr.rel (%p252_p3) target bundleno = 1339 (0x53b), region = 48 }
   0xe   : > { %p287_p4 = scmp.lt.s32.totalorder %s1952_s24, 1  ;;  %v1962_v0 = vmov 0   ;;  %v438_v1 = vld [vmem:[%s2771_s2] sm:$0xff]  ;;  %v439_v2 = vld [vmem:[%s2771_s2 + $0x8] sm:$0xff]  ;;  %vm362_vm0 = vcmask 1041408   ;;  %vm355_vm1 = vcmask 31744  }
   0xf   : > { %507 = vmatprep.mubr.bf16.mxu1 %v1962_v0  ;;  %1739 = vset.pattern.permute.xlu0 %v1962_v0  ;;  %v312_v3 = vld [vmem:[%s2773_s4] sm:$0xff]  ;;  %v313_v4 = vld [vmem:[%s2773_s4 + $0x8] sm:$0xff]  ;;  %vm556_vm2 = vcmask 130048  }
  0x10   : > { %s2833_s24 = smov (!%p287_p4, %s1952_s24), 1  ;;  %442 = vperm.xlu0 %1739, %v438_v1   ;;  %401 = vmatprep.mubr.bf16.mxu0 %v1962_v0  ;;  %v1742_v11 = vld [vmem:[%s2772_s3] sm:$0xff]   ;;  %v1743_v37 = vld [vmem:[%s2772_s3 + $0x8] sm:$0xff]  }
  0x11   : > { %1740 = vset.pattern.permute.xlu1 %v1962_v0  ;;  %s1685_s11 = sshll.u32 %s2833_s24, 2  ;;  %v1741_v12 = vld [vmem:[%s2770_s1] sm:$0xff]   ;;  %s1686_s12 = sshll.u32 %s2833_s24, 3 }
  0x12   : > { %318 = vperm.xlu1 %1740, %v312_v3   ;;  %s2040_s14 = scalar_lea.vmem %s2769_s0, %s1685_s11  ;;  %s300_s16 = scalar_lea.vmem %s2776_s7, %s1686_s12 }
  0x13   : > { %v1937_v5 = vld.sshfl [vmem:[%s2040_s14] sm:$0x33 pattern:$0x76325410] }
  0x14   : > { %447 = vperm.xlu0 %1739, %v439_v2   ;;  %v1659_v6 = vld.sshfl [vmem:[%s2040_s14] sm:$0x33 pattern:$0x76325410]  ;;  %v463_v9 = vcombine.high %v1937_v5, %v1937_v5  ;;  %v470_v10 = vsel %vm362_vm0, %v1937_v5, 0 }
  0x15   : > { %v354_v7 = vcombine.high %v1659_v6, %v1659_v6  ;;  %v364_v8 = vsel %vm362_vm0, %v1659_v6, 0 }
  0x16   : > { %323 = vperm.xlu1 %1740, %v313_v4   ;;  %1664 = vmatprep.subr.msk.bf16.mxu1 %vm362_vm0, %v463_v9 }
  0x17   : > { %1660 = vmatprep.subr.msk.bf16.mxu0 %vm362_vm0, %v354_v7  ;;  %476 = vmatpush1.bf16.msra.mxu1 %v470_v10  ;;  %v314_v7 = vld [vmem:[%s2773_s4 + $0x10] sm:$0xff] }
  0x18   : > { %370 = vmatpush1.bf16.msra.mxu0 %v364_v8 }
  0x1a   : > { %1665 = vmatmul.mubr.msk.bf16.vlgmr.msra.gmra.mrb[0].mxu1 %vm355_vm1, %v1741_v12 }
  0x1b   : > { %1661 = vmatmul.mubr.msk.bf16.vlgmr.msra.gmra.mrb[0].mxu0 %vm355_vm1, %v1742_v11  ;;  %637 = vmatprep.mubr.bf16.mxu1 %v1962_v0 }
  0x1c   : > { %411 = vmatprep.mubr.bf16.mxu0 %v1962_v0 }
  0x23   : > { %1662 = vmatmul.mubr.msk.bf16.gmra.mrb[4].mxu0 %vm355_vm1, %v1743_v37 }
  0x8f   : > { %v443_v14 = vpop.permute.xlu0 %442 }
  0x91   : > { %v319_v13 = vpop.permute.xlu1 %318 }
  0x93   : > { %v448_v25 = vpop.permute.xlu0 %447 }
  0x95   : > { %v324_v16 = vpop.permute.xlu1 %323 }
  0xed   : > { %v509_v19 = vpop.f32.mrb[0].mxu1 }
  0xee   : > { %v403_v15 = vpop.f32.mrb[0].mxu0  ;;  %v511_v22 = vpop.f32.mrb[1].mxu1  ;;  %v510_v28 = vadd.f32 %v509_v19, %v443_v14 }
  0xef   : > { %v404_v17 = vadd.f32 %v403_v15, %v319_v13  ;;  %v405_v18 = vpop.f32.mrb[1].mxu0  ;;  %v513_v26 = vpop.f32.mrb[2].mxu1  ;;  %v512_v32 = vadd.f32 %v511_v22, %v443_v14 }
  0xf0   : > { %v406_v20 = vadd.f32 %v405_v18, %v319_v13  ;;  %v407_v21 = vpop.f32.mrb[2].mxu0  ;;  %v514_v29 = vadd.f32 %v513_v26, %v448_v25  ;;  %v515_v30 = vpop.f32.mrb[3].mxu1 }
  0xf1   : > { %v408_v23 = vadd.f32 %v407_v21, %v324_v16  ;;  %v409_v24 = vpop.f32.mrb[3].mxu0  ;;  %v516_v33 = vadd.f32 %v515_v30, %v448_v25  ;;  %v315_v21 = vld [vmem:[%s2773_s4 + $0x18] sm:$0xff] }
  0xf2   : > { %v410_v27 = vadd.f32 %v409_v24, %v324_v16  ;;  %v518_v35 = vpack.c.bf16 %v514_v29, %v510_v28 }
  0xf3   : > { %v422_v31 = vpack.c.bf16 %v408_v23, %v404_v17  ;;  %v519_v36 = vpack.c.bf16 %v516_v33, %v512_v32 }
  0xf4   : > { %v423_v34 = vpack.c.bf16 %v410_v27, %v406_v20  ;;  %524 = vxpose.xlu0.c.b16.start.end [1/1] (short) %v518_v35, 128 }
  0xf5   : > { %540 = vxpose.xlu1.c.b16.start.end [1/1] (short) %v519_v36, 128 }
  0xf6   : > { %605 = vmatprep.subr.bf16.mxu1 %v423_v34  ;;  %v2131_v9 = vpop.f32.mrb[4].mxu0 }
  0xf7   : > { %606 = vmatpush1.bf16.msra.mxu1 %v422_v31  ;;  %v2135_v11 = vpop.f32.mrb[5].mxu0 }
  0xf8   : > { %v2162_v24 = vpop.f32.mrb[6].mxu0 }
  0xf9   : > { %v2164_v25 = vpop.f32.mrb[7].mxu0 }
 0x15a   : > { %v532_v38 = vpop.trf.xlu0 }
 0x15b   : > { %1666 = vmatmul.mubr.msk.bf16.vlgmr.msra.gmra.mrb[4].mxu1 %vm556_vm2, %v532_v38  ;;  %v548_v46 = vpop.trf.xlu1 }
 0x15c   : > { %647 = vmatprep.mubr.bf16.mxu1 %v1962_v0 }
 0x15e   : > { %v533_v39 = vpop.trf.xlu0 }
 0x15f   : > { %v549_v47 = vpop.trf.xlu1 }
 0x162   : > { %v534_v40 = vpop.trf.xlu0 }
 0x163   : > { %1667 = vmatmul.mubr.msk.bf16.gmra.mrb[8].mxu1 %vm556_vm2, %v533_v39  ;;  %v550_v48 = vpop.trf.xlu1 }
 0x164   : > { %657 = vmatprep.mubr.bf16.mxu1 %v1962_v0 }
 0x166   : > { %v535_v41 = vpop.trf.xlu0 }
 0x167   : > { %v551_v49 = vpop.trf.xlu1 }
 0x16a   : > { %v536_v42 = vpop.trf.xlu0 }
 0x16b   : > { %1668 = vmatmul.mubr.msk.bf16.gmra.mrb[12].mxu1 %vm556_vm2, %v534_v40  ;;  %v552_v50 = vpop.trf.xlu1 }
 0x16c   : > { %667 = vmatprep.mubr.bf16.mxu1 %v1962_v0 }
 0x16e   : > { %v537_v43 = vpop.trf.xlu0 }
 0x16f   : > { %v553_v51 = vpop.trf.xlu1 }
 0x172   : > { %v538_v44 = vpop.trf.xlu0 }
 0x173   : > { %1669 = vmatmul.mubr.msk.bf16.gmra.mrb[16].mxu1 %vm556_vm2, %v535_v41  ;;  %v554_v52 = vpop.trf.xlu1 }
 0x174   : > { %677 = vmatprep.mubr.bf16.mxu1 %v1962_v0 }
 0x176   : > { %v539_v45 = vpop.trf.xlu0 }
 0x177   : > { %v555_v53 = vpop.trf.xlu1 }
 0x17b   : > { %1670 = vmatmul.mubr.msk.bf16.gmra.mrb[20].mxu1 %vm556_vm2, %v536_v42 }
 0x17c   : > { %687 = vmatprep.mubr.bf16.mxu1 %v1962_v0 }
 0x183   : > { %1671 = vmatmul.mubr.msk.bf16.gmra.mrb[24].mxu1 %vm556_vm2, %v537_v43 }
 0x184   : > { %697 = vmatprep.mubr.bf16.mxu1 %v1962_v0 }
 0x18b   : > { %1672 = vmatmul.mubr.msk.bf16.gmra.mrb[28].mxu1 %vm556_vm2, %v538_v44 }
 0x18c   : > { %707 = vmatprep.mubr.bf16.mxu1 %v1962_v0 }
 0x193   : > { %1673 = vmatmul.mubr.msk.bf16.gmra.mrb[32].mxu1 %vm556_vm2, %v539_v45 }
 0x194   : > { %717 = vmatprep.mubr.bf16.mxu1 %v1962_v0 }
 0x19b   : > { %1674 = vmatmul.mubr.msk.bf16.gmra.mrb[36].mxu1 %vm556_vm2, %v548_v46 }
 0x19c   : > { %727 = vmatprep.mubr.bf16.mxu1 %v1962_v0 }
 0x1a3   : > { %1675 = vmatmul.mubr.msk.bf16.gmra.mrb[40].mxu1 %vm556_vm2, %v549_v47 }
 0x1a4   : > { %737 = vmatprep.mubr.bf16.mxu1 %v1962_v0 }
 0x1ab   : > { %1676 = vmatmul.mubr.msk.bf16.gmra.mrb[44].mxu1 %vm556_vm2, %v550_v48 }
 0x1ac   : > { %747 = vmatprep.mubr.bf16.mxu1 %v1962_v0 }
 0x1b3   : > { %1677 = vmatmul.mubr.msk.bf16.gmra.mrb[48].mxu1 %vm556_vm2, %v551_v49 }
 0x1b4   : > { %757 = vmatprep.mubr.bf16.mxu1 %v1962_v0 }
 0x1bb   : > { %1678 = vmatmul.mubr.msk.bf16.gmra.mrb[52].mxu1 %vm556_vm2, %v552_v50 }
 0x1bc   : > { %767 = vmatprep.mubr.bf16.mxu1 %v1962_v0 }
 0x1c3   : > { %1679 = vmatmul.mubr.msk.bf16.gmra.mrb[56].mxu1 %vm556_vm2, %v553_v51 }
 0x1c4   : > { %777 = vmatprep.mubr.bf16.mxu1 %v1962_v0 }
 0x1cb   : > { %1680 = vmatmul.mubr.msk.bf16.gmra.mrb[60].mxu1 %vm556_vm2, %v554_v52 }
 0x1cc   : > { %787 = vmatprep.mubr.bf16.mxu1 %v1962_v0 }
 0x1d3   : > { %1681 = vmatmul.mubr.msk.bf16.gmra.mrb[64].mxu1 %vm556_vm2, %v555_v53 }
 0x22e   : > { %v2092_v54 = vpop.f32.mrb[4].mxu1 }
 0x22f   : > { %v2094_v55 = vpop.f32.mrb[5].mxu1 }
 0x230   : > { %v2096_v56 = vpop.f32.mrb[6].mxu1  ;;  %v798_v57 = vmax.f32 %v2092_v54, %v2094_v55 }
 0x231   : > { %v2100_v58 = vpop.f32.mrb[7].mxu1 }
 0x232   : > { %799 = vmax.xlane.f32.xlu0 %v798_v57  ;;  %v801_v59 = vmax.f32 %v2096_v56, %v2100_v58 }
 0x234   : > { %802 = vmax.xlane.f32.xlu1 %v801_v59 }
 0x236   : > { %v2104_v60 = vpop.f32.mrb[8].mxu1 }
 0x237   : > { %v2106_v61 = vpop.f32.mrb[9].mxu1 }
 0x238   : > { %v2108_v62 = vpop.f32.mrb[10].mxu1  ;;  %v804_v63 = vmax.f32 %v2104_v60, %v2106_v61 }
 0x239   : > { %v2112_v0 = vpop.f32.mrb[11].mxu1 }
 0x23a   : > { %805 = vmax.xlane.f32.xlu0 %v804_v63  ;;  %v807_v1 = vmax.f32 %v2108_v62, %v2112_v0 }
 0x23e   : > { %808 = vmax.xlane.f32.xlu0 %v807_v1  ;;  %v2116_v2 = vpop.f32.mrb[12].mxu1 }
 0x23f   : > { %v2118_v3 = vpop.f32.mrb[13].mxu1 }
 0x240   : > { %v2120_v4 = vpop.f32.mrb[14].mxu1  ;;  %v810_v5 = vmax.f32 %v2116_v2, %v2118_v3 }
 0x241   : > { %v2124_v6 = vpop.f32.mrb[15].mxu1 }
 0x242   : > { %v813_v8 = vmax.f32 %v2120_v4, %v2124_v6 }
 0x245   : > { %328 = vperm.xlu1 %1740, %v314_v7  }
 0x246   : > { %v2133_v10 = vpop.f32.mrb[16].mxu1 }
 0x247   : > { %v2137_v12 = vpop.f32.mrb[17].mxu1 }
 0x248   : > { %v2139_v13 = vpop.f32.mrb[18].mxu1  ;;  %v816_v14 = vmax.f32 %v2133_v10, %v2137_v12 }
 0x249   : > { %v2143_v15 = vpop.f32.mrb[19].mxu1 }
 0x24a   : > { %v819_v16 = vmax.f32 %v2139_v13, %v2143_v15 }
 0x24e   : > { %v2147_v17 = vpop.f32.mrb[20].mxu1 }
 0x24f   : > { %v2149_v18 = vpop.f32.mrb[21].mxu1 }
 0x250   : > { %v2151_v19 = vpop.f32.mrb[22].mxu1  ;;  %v822_v20 = vmax.f32 %v2147_v17, %v2149_v18 }
 0x251   : > { %v2158_v22 = vpop.f32.mrb[23].mxu1 }
 0x252   : > { %v825_v23 = vmax.f32 %v2151_v19, %v2158_v22 }
 0x254   : > { %333 = vperm.xlu0 %1739, %v315_v21  }
 0x256   : > { %v2166_v26 = vpop.f32.mrb[24].mxu1 }
 0x257   : > { %v2168_v27 = vpop.f32.mrb[25].mxu1 }
 0x258   : > { %v2170_v28 = vpop.f32.mrb[26].mxu1  ;;  %v828_v29 = vmax.f32 %v2166_v26, %v2168_v27 }
 0x259   : > { %v2174_v30 = vpop.f32.mrb[27].mxu1 }
 0x25a   : > { %v831_v31 = vmax.f32 %v2170_v28, %v2174_v30 }
 0x25e   : > { %v2178_v32 = vpop.f32.mrb[28].mxu1 }
 0x25f   : > { %v2180_v33 = vpop.f32.mrb[29].mxu1 }
 0x260   : > { %v2182_v34 = vpop.f32.mrb[30].mxu1  ;;  %v834_v35 = vmax.f32 %v2178_v32, %v2180_v33 }
 0x261   : > { %v2186_v36 = vpop.f32.mrb[31].mxu1 }
 0x262   : > { %v837_v37 = vmax.f32 %v2182_v34, %v2186_v36 }
 0x266   : > { %v2190_v38 = vpop.f32.mrb[32].mxu1 }
 0x267   : > { %v2192_v39 = vpop.f32.mrb[33].mxu1 }
 0x268   : > { %v2194_v40 = vpop.f32.mrb[34].mxu1  ;;  %v840_v41 = vmax.f32 %v2190_v38, %v2192_v39 }
 0x269   : > { %811 = vmax.xlane.f32.xlu1 %v810_v5  ;;  %v2198_v42 = vpop.f32.mrb[35].mxu1 }
 0x26a   : > { %v843_v43 = vmax.f32 %v2194_v40, %v2198_v42 }
 0x26d   : > { %817 = vmax.xlane.f32.xlu1 %v816_v14 }
 0x26e   : > { %v2202_v44 = vpop.f32.mrb[36].mxu1 }
 0x26f   : > { %v2204_v45 = vpop.f32.mrb[37].mxu1 }
 0x270   : > { %v2206_v46 = vpop.f32.mrb[38].mxu1  ;;  %v846_v47 = vmax.f32 %v2202_v44, %v2204_v45 }
 0x271   : > { %823 = vmax.xlane.f32.xlu1 %v822_v20  ;;  %v2210_v48 = vpop.f32.mrb[39].mxu1 }
 0x272   : > { %v849_v49 = vmax.f32 %v2206_v46, %v2210_v48 }
 0x273   : > { %814 = vmax.xlane.f32.xlu0 %v813_v8 }
 0x275   : > { %829 = vmax.xlane.f32.xlu1 %v828_v29 }
 0x276   : > { %v2214_v50 = vpop.f32.mrb[40].mxu1 }
 0x277   : > { %820 = vmax.xlane.f32.xlu0 %v819_v16  ;;  %v2216_v51 = vpop.f32.mrb[41].mxu1 }
 0x278   : > { %v2218_v52 = vpop.f32.mrb[42].mxu1  ;;  %v852_v53 = vmax.f32 %v2214_v50, %v2216_v51 }
 0x279   : > { %835 = vmax.xlane.f32.xlu1 %v834_v35  ;;  %v2222_v57 = vpop.f32.mrb[43].mxu1 }
 0x27a   : > { %v855_v59 = vmax.f32 %v2218_v52, %v2222_v57 }
 0x27b   : > { %826 = vmax.xlane.f32.xlu0 %v825_v23 }
 0x27d   : > { %841 = vmax.xlane.f32.xlu1 %v840_v41 }
 0x27e   : > { %v2226_v63 = vpop.f32.mrb[44].mxu1 }
 0x27f   : > { %832 = vmax.xlane.f32.xlu0 %v831_v31  ;;  %v2228_v1 = vpop.f32.mrb[45].mxu1 }
 0x280   : > { %v2230_v5 = vpop.f32.mrb[46].mxu1  ;;  %v858_v7 = vmax.f32 %v2226_v63, %v2228_v1 }
 0x281   : > { %2794 = vst [vmem:[#allocation3_spill] sm:$0xff] %v2230_v5  ;;  %847 = vmax.xlane.f32.xlu1 %v846_v47  ;;  %v2234_v8 = vpop.f32.mrb[47].mxu1 }
 0x282   : > { %2795 = vst [vmem:[#allocation4_spill] sm:$0xff] %v2234_v8  ;;  %v861_v14 = vmax.f32 %v2230_v5, %v2234_v8 }
 0x283   : > { %838 = vmax.xlane.f32.xlu0 %v837_v37 }
 0x285   : > { %853 = vmax.xlane.f32.xlu1 %v852_v53 }
 0x286   : > { %v2238_v16 = vpop.f32.mrb[48].mxu1 }
 0x287   : > { %844 = vmax.xlane.f32.xlu0 %v843_v43  ;;  %v2240_v20 = vpop.f32.mrb[49].mxu1 }
 0x288   : > { %v2242_v21 = vpop.f32.mrb[50].mxu1  ;;  %v864_v23 = vmax.f32 %v2238_v16, %v2240_v20 }
 0x289   : > { %2796 = vst [vmem:[#allocation5_spill] sm:$0xff] %v2242_v21  ;;  %859 = vmax.xlane.f32.xlu1 %v858_v7  ;;  %v2246_v29 = vpop.f32.mrb[51].mxu1 }
 0x28a   : > { %2797 = vst [vmem:[#allocation6_spill] sm:$0xff] %v2246_v29  ;;  %v867_v31 = vmax.f32 %v2242_v21, %v2246_v29 }
 0x28b   : > { %850 = vmax.xlane.f32.xlu0 %v849_v49 }
 0x28d   : > { %865 = vmax.xlane.f32.xlu1 %v864_v23 }
 0x28e   : > { %v2250_v35 = vpop.f32.mrb[52].mxu1 }
 0x28f   : > { %856 = vmax.xlane.f32.xlu0 %v855_v59  ;;  %v2252_v37 = vpop.f32.mrb[53].mxu1 }
 0x290   : > { %v870_v41 = vmax.f32 %v2250_v35, %v2252_v37  ;;  %v2256_v43 = vpop.f32.mrb[54].mxu1 }
 0x291   : > { %2798 = vst [vmem:[#allocation7_spill] sm:$0xff] %v2256_v43  ;;  %v2258_v47 = vpop.f32.mrb[55].mxu1 }
 0x292   : > { %2799 = vst [vmem:[#allocation8_spill] sm:$0xff] %v2258_v47  ;;  %871 = vmax.xlane.f32.xlu1 %v870_v41  ;;  %v873_v53 = vmax.f32 %v2256_v43, %v2258_v47 }
 0x293   : > { %862 = vmax.xlane.f32.xlu0 %v861_v14 }
 0x296   : > { %v2262_v7 = vpop.f32.mrb[56].mxu1 }
 0x297   : > { %2800 = vst [vmem:[#allocation9_spill] sm:$0xff] %v2262_v7  ;;  %868 = vmax.xlane.f32.xlu0 %v867_v31  ;;  %v2264_v49 = vpop.f32.mrb[57].mxu1 }
 0x298   : > { %2801 = vst [vmem:[#allocation10_spill] sm:$0xff] %v2264_v49  ;;  %v876_v59 = vmax.f32 %v2262_v7, %v2264_v49  ;;  %v2268_v23 = vpop.f32.mrb[58].mxu1 }
 0x299   : > { %2802 = vst [vmem:[#allocation11_spill] sm:$0xff] %v2268_v23  ;;  %v2270_v29 = vpop.f32.mrb[59].mxu1 }
 0x29a   : > { %2803 = vst [vmem:[#allocation12_spill] sm:$0xff] %v2270_v29  ;;  %877 = vmax.xlane.f32.xlu1 %v876_v59  ;;  %v879_v41 = vmax.f32 %v2268_v23, %v2270_v29 }
 0x29b   : > { %874 = vmax.xlane.f32.xlu0 %v873_v53 }
 0x29e   : > { %v2274_v21 = vpop.f32.mrb[60].mxu1 }
 0x29f   : > { %2804 = vst [vmem:[#allocation13_spill] sm:$0xff] %v2274_v21  ;;  %880 = vmax.xlane.f32.xlu0 %v879_v41  ;;  %v2276_v14 = vpop.f32.mrb[61].mxu1 }
 0x2a0   : > { %2805 = vst [vmem:[#allocation14_spill] sm:$0xff] %v2276_v14  ;;  %v2278_v31 = vpop.f32.mrb[62].mxu1  ;;  %v882_v47 = vmax.f32 %v2274_v21, %v2276_v14 }
 0x2a1   : > { %2806 = vst [vmem:[#allocation15_spill] sm:$0xff] %v2278_v31  ;;  %v2282_v43 = vpop.f32.mrb[63].mxu1 }
 0x2a2   : > { %2807 = vst [vmem:[#allocation16_spill] sm:$0xff] %v2282_v43  ;;  %883 = vmax.xlane.f32.xlu1 %v882_v47  ;;  %v885_v59 = vmax.f32 %v2278_v31, %v2282_v43 }
 0x2a4   : > { %886 = vmax.xlane.f32.xlu0 %v885_v59 }
 0x2a6   : > { %v2286_v49 = vpop.f32.mrb[64].mxu1 }
 0x2a7   : > { %2808 = vst [vmem:[#allocation17_spill] sm:$0xff] %v2286_v49  ;;  %v2288_v53 = vpop.f32.mrb[65].mxu1 }
 0x2a8   : > { %2809 = vst [vmem:[#allocation18_spill] sm:$0xff] %v2288_v53  ;;  %v2290_v29 = vpop.f32.mrb[66].mxu1  ;;  %v888_v41 = vmax.f32 %v2286_v49, %v2288_v53 }
 0x2a9   : > { %v2294_v23 = vpop.f32.mrb[67].mxu1 }
 0x2aa   : > { %2810 = vst [vmem:[#allocation19_spill] sm:$0xff] %v2294_v23  ;;  %889 = vmax.xlane.f32.xlu1 %v888_v41  ;;  %v891_v14 = vmax.f32 %v2290_v29, %v2294_v23 }
 0x2ac   : > { %892 = vmax.xlane.f32.xlu0 %v891_v14 }
 0x2bf   : > { %v800_v47 = vpop.xlane.xlu0 %799 }
 0x2c0   : > { %v894_v43 = vsub.f32 %v2092_v54, %v800_v47  ;;  %v895_v59 = vsub.f32 %v2094_v55, %v800_v47 }
 0x2c1   : > { %v803_v31 = vpop.xlane.xlu1 %802 }
 0x2c2   : > { %v958_v21 = vmul.f32 1.442695, %v894_v43  ;;  %v960_v7 = vmul.f32 1.442695, %v895_v59  ;;  %v896_v8 = vsub.f32 %v2096_v56, %v803_v31  ;;  %v897_v5 = vsub.f32 %v2100_v58, %v803_v31 }
 0x2c4   : > { %1744 = vpow2.f32 %v958_v21  ;;  %v962_v53 = vmul.f32 1.442695, %v896_v8  ;;  %v964_v49 = vmul.f32 1.442695, %v897_v5 }
 0x2c5   : > { %1746 = vpow2.f32 %v960_v7 }
 0x2c6   : > { %1748 = vpow2.f32 %v962_v53 }
 0x2c7   : > { %1750 = vpow2.f32 %v964_v49  ;;  %v806_v41 = vpop.xlane.xlu0 %805  ;;  %v329_v49 = vpop.permute.xlu1 %328 }
 0x2c8   : > { %v898_v14 = vsub.f32 %v2104_v60, %v806_v41  ;;  %v899_v54 = vsub.f32 %v2106_v61, %v806_v41 }
 0x2ca   : > { %v966_v23 = vmul.f32 1.442695, %v898_v14  ;;  %v968_v55 = vmul.f32 1.442695, %v899_v54 }
 0x2cb   : > { %v809_v47 = vpop.xlane.xlu0 %808 }
 0x2cc   : > { %1752 = vpow2.f32 %v966_v23  ;;  %v900_v43 = vsub.f32 %v2108_v62, %v809_v47  ;;  %v901_v56 = vsub.f32 %v2112_v0, %v809_v47  ;;  %v414_v23 = vadd.f32 %v2131_v9, %v329_v49 }
 0x2cd   : > { %1754 = vpow2.f32 %v968_v55  ;;  %v416_v0 = vadd.f32 %v2135_v11, %v329_v49 }
 0x2ce   : > { %v1745_v58 = vpop.eup %1744  ;;  %v970_v8 = vmul.f32 1.442695, %v900_v43  ;;  %v972_v5 = vmul.f32 1.442695, %v901_v56 }
 0x2cf   : > { %v1747_v21 = vpop.eup %1746 }
 0x2d0   : > { %v1749_v7 = vpop.eup %1748  ;;  %1756 = vpow2.f32 %v970_v8  ;;  %v1086_v31 = vadd.f32 %v1747_v21, %v1745_v58 }
 0x2d1   : > { %v1751_v60 = vpop.eup %1750  ;;  %1758 = vpow2.f32 %v972_v5  ;;  %v1214_v61 = vpack.c.bf16 %v1749_v7, %v1745_v58 }
 0x2d2   : > { %1087 = vadd.xlane.f32.xlu1 %v1086_v31  ;;  %v1215_v53 = vpack.c.bf16 %v1751_v60, %v1747_v21  ;;  %v1089_v59 = vadd.f32 %v1751_v60, %v1749_v7 }
 0x2d3   : > { %v334_v62 = vpop.permute.xlu0 %333 }
 0x2d4   : > { %1278 = vmatprep.mubr.bf16.mxu0 %v1215_v53  ;;  %v418_v41 = vadd.f32 %v2162_v24, %v334_v62  ;;  %v420_v14 = vadd.f32 %v2164_v25, %v334_v62  ;;  %1090 = vadd.xlane.f32.xlu0 %v1089_v59 }
 0x2d6   : > { %v1753_v54 = vpop.eup %1752  ;;  %v424_v55 = vpack.c.bf16 %v418_v41, %v414_v23  ;;  %v425_v47 = vpack.c.bf16 %v420_v14, %v416_v0 }
 0x2d7   : > { %v1755_v43 = vpop.eup %1754 }
 0x2d8   : > { %1246 = vmatprep.subr.bf16.mxu0 %v425_v47  ;;  %v2310_v56 = vadd.f32 %v1755_v43, %v1753_v54 }
 0x2d9   : > { %1247 = vmatpush1.bf16.xpose.msra.mxu0 %v424_v55 }
 0x2da   : > { %v1757_v58 = vpop.eup %1756 }
 0x2db   : > { %v1759_v8 = vpop.eup %1758  ;;  %v1216_v9 = vpack.c.bf16 %v1757_v58, %v1753_v54 }
 0x2dc   : > { %v1217_v5 = vpack.c.bf16 %v1759_v8, %v1755_v43  ;;  %v2312_v21 = vadd.f32 %v1759_v8, %v1757_v58 }
 0x2e0   : > { %1279 = vmatmul.mubr.bf16.vlgmr.msra.gmra.mrb[8].mxu0 %v1214_v61 }
 0x2e1   : > { %1286 = vmatprep.mubr.bf16.mxu0 %v1217_v5 }
 0x2e8   : > { %1287 = vmatmul.mubr.bf16.gmra.mrb[12].mxu0 %v1216_v9 }
 0x2f6   : > { %v812_v11 = vpop.xlane.xlu1 %811 }
 0x2f7   : > { %v902_v24 = vsub.f32 %v2116_v2, %v812_v11  ;;  %v903_v25 = vsub.f32 %v2118_v3, %v812_v11 }
 0x2f9   : > { %v974_v7 = vmul.f32 1.442695, %v902_v24  ;;  %v976_v49 = vmul.f32 1.442695, %v903_v25 }
 0x2fa   : > { %v818_v31 = vpop.xlane.xlu1 %817 }
 0x2fb   : > { %1760 = vpow2.f32 %v974_v7  ;;  %v906_v60 = vsub.f32 %v2133_v10, %v818_v31  ;;  %v907_v53 = vsub.f32 %v2137_v12, %v818_v31 }
 0x2fc   : > { %1762 = vpow2.f32 %v976_v49 }
 0x2fd   : > { %v982_v59 = vmul.f32 1.442695, %v906_v60  ;;  %v984_v23 = vmul.f32 1.442695, %v907_v53 }
 0x2fe   : > { %v824_v62 = vpop.xlane.xlu1 %823 }
 0x2ff   : > { %1764 = vpow2.f32 %v982_v59  ;;  %v910_v61 = vsub.f32 %v2147_v17, %v824_v62  ;;  %v911_v0 = vsub.f32 %v2149_v18, %v824_v62 }
 0x300   : > { %1766 = vpow2.f32 %v984_v23  ;;  %v815_v2 = vpop.xlane.xlu0 %814 }
 0x301   : > { %v990_v3 = vmul.f32 1.442695, %v910_v61  ;;  %v992_v41 = vmul.f32 1.442695, %v911_v0  ;;  %v904_v14 = vsub.f32 %v2120_v4, %v815_v2  ;;  %v905_v54 = vsub.f32 %v2124_v6, %v815_v2 }
 0x302   : > { %v830_v10 = vpop.xlane.xlu1 %829 }
 0x303   : > { %1768 = vpow2.f32 %v990_v3  ;;  %v978_v12 = vmul.f32 1.442695, %v904_v14  ;;  %v980_v55 = vmul.f32 1.442695, %v905_v54  ;;  %v914_v47 = vsub.f32 %v2166_v26, %v830_v10 }
 0x304   : > { %1770 = vpow2.f32 %v992_v41  ;;  %v915_v43 = vsub.f32 %v2168_v27, %v830_v10  ;;  %v821_v17 = vpop.xlane.xlu0 %820 }
 0x305   : > { %v2324_v58 = vpop.eup %1760  ;;  %1772 = vpow2.f32 %v978_v12  ;;  %v998_v18 = vmul.f32 1.442695, %v914_v47  ;;  %v908_v8 = vsub.f32 %v2139_v13, %v821_v17  ;;  %v909_v4 = vsub.f32 %v2143_v15, %v821_v17 }
 0x306   : > { %v2328_v9 = vpop.eup %1762  ;;  %1774 = vpow2.f32 %v980_v55  ;;  %v1000_v6 = vmul.f32 1.442695, %v915_v43  ;;  %v836_v5 = vpop.xlane.xlu1 %835 }
 0x307   : > { %1776 = vpow2.f32 %v998_v18  ;;  %v986_v11 = vmul.f32 1.442695, %v908_v8  ;;  %v988_v26 = vmul.f32 1.442695, %v909_v4  ;;  %v918_v24 = vsub.f32 %v2178_v32, %v836_v5 }
 0x308   : > { %1778 = vpow2.f32 %v1000_v6  ;;  %v919_v27 = vsub.f32 %v2180_v33, %v836_v5  ;;  %v827_v25 = vpop.xlane.xlu0 %826  ;;  %v2334_v7 = vadd.f32 %v2328_v9, %v2324_v58 }
 0x309   : > { %v2336_v13 = vpop.eup %1764  ;;  %1780 = vpow2.f32 %v986_v11  ;;  %v1006_v15 = vmul.f32 1.442695, %v918_v24  ;;  %v912_v49 = vsub.f32 %v2151_v19, %v827_v25  ;;  %v913_v31 = vsub.f32 %v2158_v22, %v827_v25 }
 0x30a   : > { %v2340_v60 = vpop.eup %1766  ;;  %1782 = vpow2.f32 %v988_v26  ;;  %v1008_v32 = vmul.f32 1.442695, %v919_v27  ;;  %v842_v53 = vpop.xlane.xlu1 %841 }
 0x30b   : > { %1784 = vpow2.f32 %v1006_v15  ;;  %v994_v33 = vmul.f32 1.442695, %v912_v49  ;;  %v996_v59 = vmul.f32 1.442695, %v913_v31  ;;  %v922_v23 = vsub.f32 %v2190_v38, %v842_v53 }
 0x30c   : > { %1786 = vpow2.f32 %v1008_v32  ;;  %v923_v62 = vsub.f32 %v2192_v39, %v842_v53  ;;  %v833_v61 = vpop.xlane.xlu0 %832  ;;  %v2346_v0 = vadd.f32 %v2340_v60, %v2336_v13 }
 0x30d   : > { %v2348_v19 = vpop.eup %1768  ;;  %1788 = vpow2.f32 %v994_v33  ;;  %v1014_v22 = vmul.f32 1.442695, %v922_v23  ;;  %v916_v2 = vsub.f32 %v2170_v28, %v833_v61  ;;  %v917_v3 = vsub.f32 %v2174_v30, %v833_v61 }
 0x30e   : > { %v2352_v41 = vpop.eup %1770  ;;  %1790 = vpow2.f32 %v996_v59  ;;  %v1016_v38 = vmul.f32 1.442695, %v923_v62  ;;  %v848_v14 = vpop.xlane.xlu1 %847 }
 0x30f   : > { %v1773_v54 = vpop.eup %1772  ;;  %1792 = vpow2.f32 %v1014_v22  ;;  %v1002_v39 = vmul.f32 1.442695, %v916_v2  ;;  %v1004_v10 = vmul.f32 1.442695, %v917_v3  ;;  %v926_v12 = vsub.f32 %v2202_v44, %v848_v14 }
 0x310   : > { %v1775_v55 = vpop.eup %1774  ;;  %1794 = vpow2.f32 %v1016_v38  ;;  %v927_v47 = vsub.f32 %v2204_v45, %v848_v14  ;;  %v839_v43 = vpop.xlane.xlu0 %838  ;;  %v1218_v28 = vpack.c.bf16 %v1773_v54, %v2324_v58  ;;  %v2359_v30 = vadd.f32 %v2352_v41, %v2348_v19 }
 0x311   : > { %v2361_v17 = vpop.eup %1776  ;;  %1796 = vpow2.f32 %v1002_v39  ;;  %v1022_v18 = vmul.f32 1.442695, %v926_v12  ;;  %v920_v8 = vsub.f32 %v2182_v34, %v839_v43  ;;  %v921_v4 = vsub.f32 %v2186_v36, %v839_v43 }
 0x312   : > { %v2365_v44 = vpop.eup %1778  ;;  %1798 = vpow2.f32 %v1004_v10  ;;  %v1024_v6 = vmul.f32 1.442695, %v927_v47  ;;  %v1219_v45 = vpack.c.bf16 %v1775_v55, %v2328_v9  ;;  %v854_v5 = vpop.xlane.xlu1 %853  ;;  %v2368_v58 = vadd.f32 %v1775_v55, %v1773_v54 }
 0x313   : > { %v1781_v11 = vpop.eup %1780  ;;  %1800 = vpow2.f32 %v1022_v18  ;;  %v1010_v26 = vmul.f32 1.442695, %v920_v8  ;;  %v1012_v24 = vmul.f32 1.442695, %v921_v4  ;;  %v930_v27 = vsub.f32 %v2214_v50, %v854_v5 }
 0x314   : > { %v1783_v25 = vpop.eup %1782  ;;  %1802 = vpow2.f32 %v1024_v6  ;;  %1294 = vmatprep.mubr.bf16.mxu0 %v1219_v45  ;;  %v931_v34 = vsub.f32 %v2216_v51, %v854_v5  ;;  %v845_v36 = vpop.xlane.xlu0 %844  ;;  %v1220_v15 = vpack.c.bf16 %v1781_v11, %v2336_v13  ;;  %v2375_v9 = vadd.f32 %v2365_v44, %v2361_v17 }
 0x315   : > { %v2377_v49 = vpop.eup %1784  ;;  %1804 = vpow2.f32 %v1010_v26  ;;  %v1030_v31 = vmul.f32 1.442695, %v930_v27  ;;  %1295 = vmatmul.mubr.bf16.gmra.mrb[16].mxu0 %v1218_v28  ;;  %v924_v32 = vsub.f32 %v2194_v40, %v845_v36  ;;  %v925_v50 = vsub.f32 %v2198_v42, %v845_v36 }
 0x316   : > { %v2381_v53 = vpop.eup %1786  ;;  %1806 = vpow2.f32 %v1012_v24  ;;  %v1032_v51 = vmul.f32 1.442695, %v931_v34  ;;  %v1221_v33 = vpack.c.bf16 %v1783_v25, %v2340_v60  ;;  %v860_v13 = vpop.xlane.xlu1 %859  ;;  %v2384_v59 = vadd.f32 %v1783_v25, %v1781_v11 }
 0x317   : > { %v2386_v23 = vpop.eup %1788  ;;  %1808 = vpow2.f32 %v1030_v31  ;;  %v1018_v62 = vmul.f32 1.442695, %v924_v32  ;;  %v1020_v61 = vmul.f32 1.442695, %v925_v50  ;;  %v934_v22 = vsub.f32 %v2226_v63, %v860_v13 }
 0x318   : > { %v1791_v2 = vpop.eup %1790  ;;  %1810 = vpow2.f32 %v1032_v51  ;;  %1302 = vmatprep.mubr.bf16.mxu0 %v1221_v33  ;;  %v935_v40 = vsub.f32 %v2228_v1, %v860_v13  ;;  %v851_v42 = vpop.xlane.xlu0 %850  ;;  %v1222_v3 = vpack.c.bf16 %v2386_v23, %v2348_v19  ;;  %v2394_v60 = vadd.f32 %v2381_v53, %v2377_v49  ;;  %v2811_v51 = vld [vmem:[#allocation3_spill] sm:$0xff]  ;;  %v2812_v13 = vld [vmem:[#allocation4_spill] sm:$0xff] }
 0x319   : > { %v2396_v38 = vpop.eup %1792  ;;  %1812 = vpow2.f32 %v1018_v62  ;;  %v1038_v14 = vmul.f32 1.442695, %v934_v22  ;;  %v928_v54 = vsub.f32 %v2206_v46, %v851_v42  ;;  %v929_v63 = vsub.f32 %v2210_v48, %v851_v42 }
 0x31a   : > { %v2400_v39 = vpop.eup %1794  ;;  %1814 = vpow2.f32 %v1020_v61  ;;  %v1040_v1 = vmul.f32 1.442695, %v935_v40  ;;  %v866_v10 = vpop.xlane.xlu1 %865  ;;  %v1223_v12 = vpack.c.bf16 %v1791_v2, %v2352_v41  ;;  %v2404_v55 = vadd.f32 %v1791_v2, %v2386_v23 }
 0x31b   : > { %v2406_v47 = vpop.eup %1796  ;;  %1816 = vpow2.f32 %v1038_v14  ;;  %v1026_v43 = vmul.f32 1.442695, %v928_v54  ;;  %v1028_v28 = vmul.f32 1.442695, %v929_v63  ;;  %v938_v18 = vsub.f32 %v2238_v16, %v866_v10 }
 0x31c   : > { %v1799_v46 = vpop.eup %1798  ;;  %1818 = vpow2.f32 %v1040_v1  ;;  %v939_v48 = vsub.f32 %v2240_v20, %v866_v10  ;;  %v857_v8 = vpop.xlane.xlu0 %856  ;;  %v1224_v4 = vpack.c.bf16 %v2406_v47, %v2361_v17  ;;  %v2414_v41 = vadd.f32 %v2400_v39, %v2396_v38 }
 0x31d   : > { %v2416_v6 = vpop.eup %1800  ;;  %1820 = vpow2.f32 %v1026_v43  ;;  %v1046_v45 = vmul.f32 1.442695, %v938_v18  ;;  %1303 = vmatmul.mubr.bf16.gmra.mrb[20].mxu0 %v1220_v15  ;;  %v932_v5 = vsub.f32 %v2218_v52, %v857_v8  ;;  %v933_v16 = vsub.f32 %v2222_v57, %v857_v8  ;;  %v2813_v43 = vld [vmem:[#allocation5_spill] sm:$0xff]  ;;  %v2814_v18 = vld [vmem:[#allocation6_spill] sm:$0xff] }
 0x31e   : > { %v2420_v11 = vpop.eup %1802  ;;  %1822 = vpow2.f32 %v1028_v28  ;;  %v1048_v20 = vmul.f32 1.442695, %v939_v48  ;;  %1310 = vmatprep.mubr.bf16.mxu0 %v1223_v12  ;;  %v1225_v26 = vpack.c.bf16 %v1799_v46, %v2365_v44  ;;  %v2424_v24 = vadd.f32 %v1799_v46, %v2406_v47 }
 0x31f   : > { %v2426_v27 = vpop.eup %1804  ;;  %1824 = vpow2.f32 %v1046_v45  ;;  %v1034_v25 = vmul.f32 1.442695, %v932_v5  ;;  %v1036_v34 = vmul.f32 1.442695, %v933_v16  ;;  %v872_v36 = vpop.xlane.xlu1 %871  ;;  %v1134_v52 = vadd.f32 %v2420_v11, %v2416_v6 }
 0x320   : > { %v2430_v57 = vpop.eup %1806  ;;  %1826 = vpow2.f32 %v1048_v20  ;;  %v942_v15 = vsub.f32 %v2250_v35, %v872_v36  ;;  %v943_v31 = vsub.f32 %v2252_v37, %v872_v36  ;;  %v863_v44 = vpop.xlane.xlu0 %862  ;;  %v1226_v32 = vpack.c.bf16 %v2426_v27, %v2377_v49  ;;  %v2815_v20 = vld [vmem:[#allocation9_spill] sm:$0xff] }
 0x321   : > { %v2436_v50 = vpop.eup %1808  ;;  %1828 = vpow2.f32 %v1034_v25  ;;  %v936_v33 = vsub.f32 %v2811_v51, %v863_v44  ;;  %v937_v62 = vsub.f32 %v2812_v13, %v863_v44  ;;  %1135 = vadd.xlane.f32.xlu1 %v1134_v52  ;;  %v1227_v61 = vpack.c.bf16 %v2430_v57, %v2381_v53  ;;  %v2818_v51 = vld [vmem:[#allocation8_spill] sm:$0xff] }
 0x322   : > { %v2442_v22 = vpop.eup %1810  ;;  %1830 = vpow2.f32 %v1036_v34  ;;  %v1054_v35 = vmul.f32 1.442695, %v942_v15  ;;  %v1056_v37 = vmul.f32 1.442695, %v943_v31  ;;  %v2446_v2 = vadd.f32 %v2430_v57, %v2426_v27  ;;  %v2816_v34 = vld [vmem:[#allocation10_spill] sm:$0xff]  ;;  %v2817_v31 = vld [vmem:[#allocation7_spill] sm:$0xff] }
 0x323   : > { %v2448_v40 = vpop.eup %1812  ;;  %v1042_v42 = vmul.f32 1.442695, %v936_v33  ;;  %v1044_v14 = vmul.f32 1.442695, %v937_v62  ;;  %v1140_v54 = vadd.f32 %v2442_v22, %v2436_v50  ;;  %v2825_v27 = vld [vmem:[#allocation17_spill] sm:$0xff] }
 0x324   : > { %v2452_v63 = vpop.eup %1814  ;;  %1832 = vpow2.f32 %v1054_v35  ;;  %v869_v1 = vpop.xlane.xlu0 %868  ;;  %v1228_v10 = vpack.c.bf16 %v2448_v40, %v2396_v38 }
 0x325   : > { %v2456_v12 = vpop.eup %1816  ;;  %1834 = vpow2.f32 %v1056_v37  ;;  %1311 = vmatmul.mubr.bf16.gmra.mrb[24].mxu0 %v1222_v3  ;;  %v940_v28 = vsub.f32 %v2813_v43, %v869_v1  ;;  %v941_v46 = vsub.f32 %v2814_v18, %v869_v1  ;;  %1093 = vadd.xlane.f32.xlu1 %v2310_v56  ;;  %v1229_v48 = vpack.c.bf16 %v2452_v63, %v2400_v39 }
 0x326   : > { %v2466_v8 = vpop.eup %1818  ;;  %1836 = vpow2.f32 %v1042_v42  ;;  %1318 = vmatprep.mubr.bf16.mxu0 %v1225_v26  ;;  %v2470_v45 = vadd.f32 %v2452_v63, %v2448_v40 }
 0x327   : > { %v2472_v5 = vpop.eup %1820  ;;  %1838 = vpow2.f32 %v1044_v14  ;;  %v1050_v19 = vmul.f32 1.442695, %v940_v28  ;;  %v1052_v23 = vmul.f32 1.442695, %v941_v46  ;;  %v878_v3 = vpop.xlane.xlu1 %877  ;;  %v1146_v56 = vadd.f32 %v2466_v8, %v2456_v12 }
 0x328   : > { %v2476_v16 = vpop.eup %1822  ;;  %v946_v25 = vsub.f32 %v2815_v20, %v878_v3  ;;  %v947_v36 = vsub.f32 %v2816_v34, %v878_v3  ;;  %v875_v26 = vpop.xlane.xlu0 %874  ;;  %v1230_v52 = vpack.c.bf16 %v2472_v5, %v2416_v6  ;;  %v2820_v3 = vld [vmem:[#allocation12_spill] sm:$0xff] }
 0x329   : > { %v2482_v15 = vpop.eup %1824  ;;  %1840 = vpow2.f32 %v1050_v19  ;;  %v944_v44 = vsub.f32 %v2817_v31, %v875_v26  ;;  %v945_v33 = vsub.f32 %v2818_v51, %v875_v26  ;;  %1141 = vadd.xlane.f32.xlu1 %v1140_v54  ;;  %v1137_v13 = vadd.f32 %v2476_v16, %v2472_v5  ;;  %v2819_v19 = vld [vmem:[#allocation11_spill] sm:$0xff]  ;;  %v2821_v31 = vld [vmem:[#allocation13_spill] sm:$0xff]  ;;  %v2822_v51 = vld [vmem:[#allocation14_spill] sm:$0xff] }
 0x32a   : > { %v2488_v62 = vpop.eup %1826  ;;  %1842 = vpow2.f32 %v1052_v23  ;;  %v1062_v35 = vmul.f32 1.442695, %v946_v25  ;;  %v1064_v37 = vmul.f32 1.442695, %v947_v36  ;;  %v1231_v42 = vpack.c.bf16 %v2476_v16, %v2420_v11 }
 0x32b   : > { %v2492_v14 = vpop.eup %1828  ;;  %v1058_v1 = vmul.f32 1.442695, %v944_v44  ;;  %v1060_v43 = vmul.f32 1.442695, %v945_v33  ;;  %1138 = vadd.xlane.f32.xlu0 %v1137_v13  ;;  %v1152_v28 = vadd.f32 %v2488_v62, %v2482_v15 }
 0x32c   : > { %v2496_v54 = vpop.eup %1830  ;;  %1844 = vpow2.f32 %v1062_v35  ;;  %v881_v18 = vpop.xlane.xlu0 %880  ;;  %v1232_v46 = vpack.c.bf16 %v2492_v14, %v2436_v50 }
 0x32d   : > { %1846 = vpow2.f32 %v1064_v37  ;;  %1319 = vmatmul.mubr.bf16.gmra.mrb[28].mxu0 %v1224_v4  ;;  %v948_v23 = vsub.f32 %v2819_v19, %v881_v18  ;;  %v949_v20 = vsub.f32 %v2820_v3, %v881_v18  ;;  %1099 = vadd.xlane.f32.xlu1 %v2334_v7  ;;  %v1143_v25 = vadd.f32 %v2496_v54, %v2492_v14  ;;  %v2823_v37 = vld [vmem:[#allocation15_spill] sm:$0xff]  ;;  %v2824_v18 = vld [vmem:[#allocation16_spill] sm:$0xff] }
 0x32e   : > { %v2508_v34 = vpop.eup %1832  ;;  %1848 = vpow2.f32 %v1058_v1  ;;  %1326 = vmatprep.mubr.bf16.mxu0 %v1227_v61  ;;  %v1233_v17 = vpack.c.bf16 %v2496_v54, %v2442_v22 }
 0x32f   : > { %v2515_v47 = vpop.eup %1834  ;;  %1850 = vpow2.f32 %v1060_v43  ;;  %v1066_v4 = vmul.f32 1.442695, %v948_v23  ;;  %v1068_v36 = vmul.f32 1.442695, %v949_v20  ;;  %1096 = vadd.xlane.f32.xlu0 %v2312_v21  ;;  %v884_v7 = vpop.xlane.xlu1 %883 }
 0x330   : > { %v2518_v26 = vpop.eup %1836  ;;  %v950_v44 = vsub.f32 %v2821_v31, %v884_v7  ;;  %v951_v33 = vsub.f32 %v2822_v51, %v884_v7  ;;  %v2524_v53 = vadd.f32 %v2515_v47, %v2508_v34  ;;  %v2826_v51 = vld [vmem:[#allocation18_spill] sm:$0xff] }
 0x331   : > { %v2526_v57 = vpop.eup %1838  ;;  %1852 = vpow2.f32 %v1066_v4  ;;  %1147 = vadd.xlane.f32.xlu1 %v1146_v56  ;;  %v887_v61 = vpop.xlane.xlu0 %886  ;;  %v1234_v13 = vpack.c.bf16 %v2518_v26, %v2456_v12 }
 0x332   : > { %1854 = vpow2.f32 %v1068_v36  ;;  %v1070_v21 = vmul.f32 1.442695, %v950_v44  ;;  %v1072_v35 = vmul.f32 1.442695, %v951_v33  ;;  %v952_v1 = vsub.f32 %v2823_v37, %v887_v61  ;;  %v2827_v37 = vld [vmem:[#allocation19_spill] sm:$0xff] }
 0x333   : > { %v2531_v43 = vpop.eup %1840  ;;  %v953_v19 = vsub.f32 %v2824_v18, %v887_v61  ;;  %1144 = vadd.xlane.f32.xlu0 %v1143_v25  ;;  %v1149_v23 = vadd.f32 %v2526_v57, %v2518_v26  ;;  %v1235_v56 = vpack.c.bf16 %v2526_v57, %v2466_v8 }
 0x334   : > { %v2538_v3 = vpop.eup %1842  ;;  %1856 = vpow2.f32 %v1070_v21  ;;  %v1074_v20 = vmul.f32 1.442695, %v952_v1  ;;  %v1236_v4 = vpack.c.bf16 %v2531_v43, %v2482_v15 }
 0x335   : > { %1858 = vpow2.f32 %v1072_v35  ;;  %v1076_v36 = vmul.f32 1.442695, %v953_v19  ;;  %1327 = vmatmul.mubr.bf16.gmra.mrb[32].mxu0 %v1226_v32  ;;  %1105 = vadd.xlane.f32.xlu1 %v2346_v0  ;;  %v1155_v25 = vadd.f32 %v2538_v3, %v2531_v43  ;;  %v1237_v7 = vpack.c.bf16 %v2538_v3, %v2488_v62 }
 0x336   : > { %v2550_v31 = vpop.eup %1844  ;;  %1860 = vpow2.f32 %v1074_v20  ;;  %1334 = vmatprep.mubr.bf16.mxu0 %v1229_v48 }
 0x337   : > { %v2555_v44 = vpop.eup %1846  ;;  %1862 = vpow2.f32 %v1076_v36  ;;  %1102 = vadd.xlane.f32.xlu0 %v2368_v58  ;;  %v890_v49 = vpop.xlane.xlu1 %889 }
 0x338   : > { %v2558_v0 = vpop.eup %1848  ;;  %v954_v32 = vsub.f32 %v2825_v27, %v890_v49  ;;  %v955_v33 = vsub.f32 %v2826_v51, %v890_v49  ;;  %v1164_v61 = vadd.f32 %v2555_v44, %v2550_v31 }
 0x339   : > { %v2564_v21 = vpop.eup %1850  ;;  %1153 = vadd.xlane.f32.xlu1 %v1152_v28  ;;  %v893_v39 = vpop.xlane.xlu0 %892  ;;  %v1238_v63 = vpack.c.bf16 %v2558_v0, %v2508_v34 }
 0x33a   : > { %v1078_v48 = vmul.f32 1.442695, %v954_v32  ;;  %v1080_v35 = vmul.f32 1.442695, %v955_v33  ;;  %v956_v58 = vsub.f32 %v2290_v29, %v893_v39  ;;  %v957_v1 = vsub.f32 %v2827_v37, %v893_v39 }
 0x33b   : > { %v1853_v18 = vpop.eup %1852  ;;  %1150 = vadd.xlane.f32.xlu0 %v1149_v23  ;;  %v1161_v19 = vadd.f32 %v2564_v21, %v2558_v0  ;;  %v1239_v20 = vpack.c.bf16 %v2564_v21, %v2515_v47 }
 0x33c   : > { %v1855_v36 = vpop.eup %1854  ;;  %1864 = vpow2.f32 %v1078_v48  ;;  %v1082_v28 = vmul.f32 1.442695, %v956_v58  ;;  %v1084_v49 = vmul.f32 1.442695, %v957_v1  ;;  %v1240_v34 = vpack.c.bf16 %v1853_v18, %v2550_v31 }
 0x33d   : > { %1866 = vpow2.f32 %v1080_v35  ;;  %1335 = vmatmul.mubr.bf16.gmra.mrb[36].mxu0 %v1228_v10  ;;  %1111 = vadd.xlane.f32.xlu1 %v2359_v30  ;;  %v1167_v29 = vadd.f32 %v1855_v36, %v1853_v18  ;;  %v1241_v23 = vpack.c.bf16 %v1855_v36, %v2555_v44 }
 0x33e   : > { %v1857_v0 = vpop.eup %1856  ;;  %1868 = vpow2.f32 %v1082_v28  ;;  %1342 = vmatprep.mubr.bf16.mxu0 %v1231_v42 }
 0x33f   : > { %v1859_v47 = vpop.eup %1858  ;;  %1870 = vpow2.f32 %v1084_v49  ;;  %1108 = vadd.xlane.f32.xlu0 %v2384_v59 }
 0x340   : > { %v1861_v31 = vpop.eup %1860  ;;  %v1170_v27 = vadd.f32 %v1859_v47, %v1857_v0 }
 0x341   : > { %v1863_v32 = vpop.eup %1862  ;;  %1159 = vadd.xlane.f32.xlu1 %v2524_v53  ;;  %v1242_v38 = vpack.c.bf16 %v1861_v31, %v1857_v0 }
 0x342   : > { %v1173_v30 = vadd.f32 %v1863_v32, %v1861_v31  ;;  %v1243_v40 = vpack.c.bf16 %v1863_v32, %v1859_v47 }
 0x343   : > { %1156 = vadd.xlane.f32.xlu0 %v1155_v25 }
 0x345   : > { %1343 = vmatmul.mubr.bf16.gmra.mrb[40].mxu0 %v1230_v52  ;;  %1117 = vadd.xlane.f32.xlu1 %v2375_v9  ;;  %v1456_v9 = vld [vmem:[%s2775_s6] sm:$0xf] }
 0x346   : > { %v1865_v11 = vpop.eup %1864  ;;  %1350 = vmatprep.mubr.bf16.mxu0 %v1233_v17 }
 0x347   : > { %v1867_v59 = vpop.eup %1866  ;;  %1114 = vadd.xlane.f32.xlu0 %v2404_v55 }
 0x348   : > { %v1869_v10 = vpop.eup %1868  ;;  %v1176_v16 = vadd.f32 %v1867_v59, %v1865_v11 }
 0x349   : > { %v1871_v42 = vpop.eup %1870  ;;  %1165 = vadd.xlane.f32.xlu1 %v1164_v61  ;;  %v1244_v53 = vpack.c.bf16 %v1869_v10, %v1865_v11 }
 0x34a   : > { %v1179_v25 = vadd.f32 %v1871_v42, %v1869_v10  ;;  %v1245_v44 = vpack.c.bf16 %v1871_v42, %v1867_v59 }
 0x34b   : > { %1162 = vadd.xlane.f32.xlu0 %v1161_v19 }
 0x34d   : > { %1351 = vmatmul.mubr.bf16.gmra.mrb[44].mxu0 %v1232_v46  ;;  %1123 = vadd.xlane.f32.xlu1 %v2394_v60 }
 0x34e   : > { %1358 = vmatprep.mubr.bf16.mxu0 %v1235_v56 }
 0x34f   : > { %1120 = vadd.xlane.f32.xlu0 %v2424_v24 }
 0x351   : > { %1171 = vadd.xlane.f32.xlu1 %v1170_v27 }
 0x353   : > { %1168 = vadd.xlane.f32.xlu0 %v1167_v29 }
 0x355   : > { %1359 = vmatmul.mubr.bf16.gmra.mrb[48].mxu0 %v1234_v13  ;;  %1129 = vadd.xlane.f32.xlu1 %v2414_v41 }
 0x356   : > { %1366 = vmatprep.mubr.bf16.mxu0 %v1237_v7 }
 0x357   : > { %1126 = vadd.xlane.f32.xlu0 %v2446_v2 }
 0x359   : > { %1177 = vadd.xlane.f32.xlu1 %v1176_v16 }
 0x35b   : > { %1174 = vadd.xlane.f32.xlu0 %v1173_v30 }
 0x35d   : > { %1367 = vmatmul.mubr.bf16.gmra.mrb[52].mxu0 %v1236_v4 }
 0x35e   : > { %1374 = vmatprep.mubr.bf16.mxu0 %v1239_v20 }
 0x35f   : > { %1132 = vadd.xlane.f32.xlu0 %v2470_v45  ;;  %v1088_v60 = vpop.xlane.xlu1 %1087 }
 0x360   : > { %1872 = vrcp.f32 %v1088_v60 }
 0x361   : > { %v1091_v55 = vpop.xlane.xlu0 %1090 }
 0x362   : > { %1874 = vrcp.f32 %v1091_v55 }
 0x363   : > { %1180 = vadd.xlane.f32.xlu0 %v1179_v25 }
 0x365   : > { %1375 = vmatmul.mubr.bf16.gmra.mrb[56].mxu0 %v1238_v63  ;;  %v2643_v63 = vld [vmem:[%s2774_s5] sm:$0x3] }
 0x366   : > { %1382 = vmatprep.mubr.bf16.mxu0 %v1241_v23  ;;  %1703 = vmatprep.mubr.msk.bf16.mxu1 %vm556_vm2, %v2643_v63 }
 0x36a   : > { %1459 = vperm.xlu1 %1740, %v1456_v9   ;;  %v1873_v24 = vpop.eup %1872 }
 0x36c   : > { %v1875_v22 = vpop.eup %1874 }
 0x36d   : > { %1383 = vmatmul.mubr.bf16.gmra.mrb[60].mxu0 %v1240_v34 }
 0x36e   : > { %1390 = vmatprep.mubr.bf16.mxu0 %v1243_v40 }
 0x375   : > { %1391 = vmatmul.mubr.bf16.gmra.mrb[64].mxu0 %v1242_v38 }
 0x376   : > { %1398 = vmatprep.mubr.bf16.mxu0 %v1245_v44 }
 0x37d   : > { %1399 = vmatmul.mubr.bf16.gmra.mrb[68].mxu0 %v1244_v53 }
 0x3ae   : > { %v2616_v41 = vpop.xlane.xlu1 %1135 }
 0x3b2   : > { %v1094_v5 = vpop.xlane.xlu1 %1093 }
 0x3b3   : > { %v1280_v6 = vpop.f32.mrb[8].mxu0  ;;  %1876 = vrcp.f32 %v1094_v5 }
 0x3b4   : > { %v1282_v50 = vpop.f32.mrb[9].mxu0  ;;  %v2618_v12 = vmul.f32 %v1873_v24, %v1280_v6 }
 0x3b5   : > { %v1283_v2 = vpop.f32.mrb[10].mxu0 }
 0x3b6   : > { %v2620_v8 = vmul.f32 %v1875_v22, %v1283_v2  ;;  %v1285_v45 = vpop.f32.mrb[11].mxu0  ;;  %v2626_v26 = vpop.xlane.xlu1 %1141 }
 0x3b8   : > { %v1439_v52 = vpack.c.bf16 %v2620_v8, %v2618_v12  ;;  %v2624_v15 = vpop.xlane.xlu0 %1138 }
 0x3ba   : > { %v1100_v56 = vpop.xlane.xlu1 %1099 }
 0x3bb   : > { %v1288_v62 = vpop.f32.mrb[12].mxu0 }
 0x3bc   : > { %v1097_v14 = vpop.xlane.xlu0 %1096  ;;  %v1290_v54 = vpop.f32.mrb[13].mxu0 }
 0x3bd   : > { %1878 = vrcp.f32 %v1097_v14  ;;  %v1291_v46 = vpop.f32.mrb[14].mxu0  ;;  %v1877_v13 = vpop.eup %1876 }
 0x3be   : > { %v1293_v17 = vpop.f32.mrb[15].mxu0  ;;  %v2630_v3 = vmul.f32 %v1877_v13, %v1288_v62  ;;  %v2636_v33 = vpop.xlane.xlu1 %1147  ;;  %1880 = vrcp.f32 %v1100_v56 }
 0x3c0   : > { %v2628_v57 = vpop.xlane.xlu0 %1144 }
 0x3c2   : > { %v1106_v21 = vpop.xlane.xlu1 %1105 }
 0x3c4   : > { %v1103_v7 = vpop.xlane.xlu0 %1102 }
 0x3c5   : > { %1882 = vrcp.f32 %v1103_v7 }
 0x3c6   : > { %v2647_v48 = vpop.xlane.xlu1 %1153  ;;  %1884 = vrcp.f32 %v1106_v21 }
 0x3c7   : > { %v1879_v43 = vpop.eup %1878 }
 0x3c8   : > { %v2632_v4 = vmul.f32 %v1879_v43, %v1291_v46  ;;  %v2638_v61 = vpop.xlane.xlu0 %1150  ;;  %v1881_v20 = vpop.eup %1880 }
 0x3ca   : > { %v1440_v51 = vpack.c.bf16 %v2632_v4, %v2630_v3  ;;  %v1112_v58 = vpop.xlane.xlu1 %1111 }
 0x3cc   : > { %v1109_v39 = vpop.xlane.xlu0 %1108  ;;  %v1469_v12 = vsel %vm556_vm2, %v1440_v51, 0 }
 0x3cd   : > { %1886 = vrcp.f32 %v1109_v39 }
 0x3ce   : > { %v2651_v1 = vpop.xlane.xlu1 %1159  ;;  %1888 = vrcp.f32 %v1112_v58 }
 0x3cf   : > { %v1883_v28 = vpop.eup %1882 }
 0x3d0   : > { %v2649_v35 = vpop.xlane.xlu0 %1156  ;;  %v1885_v32 = vpop.eup %1884 }
 0x3d2   : > { %v1118_v0 = vpop.xlane.xlu1 %1117 }
 0x3d4   : > { %v1115_v37 = vpop.xlane.xlu0 %1114 }
 0x3d5   : > { %1890 = vrcp.f32 %v1115_v37 }
 0x3d6   : > { %v2661_v40 = vpop.xlane.xlu1 %1165  ;;  %1892 = vrcp.f32 %v1118_v0 }
 0x3d7   : > { %v1887_v30 = vpop.eup %1886 }
 0x3d8   : > { %v2653_v18 = vpop.xlane.xlu0 %1162  ;;  %v1889_v9 = vpop.eup %1888 }
 0x3da   : > { %v1124_v25 = vpop.xlane.xlu1 %1123 }
 0x3dc   : > { %v1121_v47 = vpop.xlane.xlu0 %1120 }
 0x3dd   : > { %1894 = vrcp.f32 %v1121_v47 }
 0x3de   : > { %v2677_v5 = vpop.xlane.xlu1 %1171  ;;  %1896 = vrcp.f32 %v1124_v25 }
 0x3df   : > { %v1891_v6 = vpop.eup %1890 }
 0x3e0   : > { %v2663_v59 = vpop.xlane.xlu0 %1168  ;;  %v1893_v54 = vpop.eup %1892 }
 0x3e2   : > { %v1130_v21 = vpop.xlane.xlu1 %1129 }
 0x3e4   : > { %v1127_v60 = vpop.xlane.xlu0 %1126 }
 0x3e5   : > { %1898 = vrcp.f32 %v1127_v60 }
 0x3e6   : > { %1900 = vrcp.f32 %v1130_v21 }
 0x3e7   : > { %v1895_v17 = vpop.eup %1894 }
 0x3e8   : > { %v1296_v19 = vpop.f32.mrb[16].mxu0  ;;  %v2679_v62 = vpop.xlane.xlu0 %1174 }
 0x3e9   : > { %v1298_v36 = vpop.f32.mrb[17].mxu0  ;;  %v2655_v34 = vmul.f32 %v1881_v20, %v1296_v19  ;;  %v1897_v19 = vpop.eup %1896 }
 0x3ea   : > { %v1299_v49 = vpop.f32.mrb[18].mxu0 }
 0x3eb   : > { %v2657_v29 = vmul.f32 %v1883_v28, %v1299_v49  ;;  %v1301_v23 = vpop.f32.mrb[19].mxu0 }
 0x3ec   : > { %v1133_v39 = vpop.xlane.xlu0 %1132 }
 0x3ed   : > { %v1441_v31 = vpack.c.bf16 %v2657_v29, %v2655_v34  ;;  %1902 = vrcp.f32 %v1133_v39 }
 0x3ee   : > { %1904 = vrcp.f32 %v2616_v41 }
 0x3ef   : > { %v1899_v36 = vpop.eup %1898  ;;  %1906 = vrcp.f32 %v2624_v15  ;;  %v1472_v3 = vsel %vm556_vm2, %v1441_v31, 0 }
 0x3f0   : > { %v1304_v27 = vpop.f32.mrb[20].mxu0  ;;  %1908 = vrcp.f32 %v2626_v26  ;;  %v1466_v26 = vsel %vm556_vm2, %v1439_v52, 0 }
 0x3f1   : > { %v1306_v38 = vpop.f32.mrb[21].mxu0  ;;  %v2665_v10 = vmul.f32 %v1885_v32, %v1304_v27  ;;  %v1901_v32 = vpop.eup %1900  ;;  %1910 = vrcp.f32 %v2628_v57 }
 0x3f2   : > { %v1307_v11 = vpop.f32.mrb[22].mxu0  ;;  %1912 = vrcp.f32 %v2636_v33 }
 0x3f3   : > { %v2667_v16 = vmul.f32 %v1887_v30, %v1307_v11  ;;  %v1309_v42 = vpop.f32.mrb[23].mxu0  ;;  %1914 = vrcp.f32 %v2638_v61 }
 0x3f4   : > { %1916 = vrcp.f32 %v2647_v48 }
 0x3f5   : > { %v1442_v53 = vpack.c.bf16 %v2667_v16, %v2665_v10  ;;  %1918 = vrcp.f32 %v2649_v35 }
 0x3f6   : > { %1920 = vrcp.f32 %v2651_v1 }
 0x3f7   : > { %v1903_v30 = vpop.eup %1902  ;;  %1922 = vrcp.f32 %v2653_v18  ;;  %v1475_v1 = vsel %vm556_vm2, %v1442_v53, 0 }
 0x3f8   : > { %v1312_v44 = vpop.f32.mrb[24].mxu0  ;;  %v1905_v60 = vpop.eup %1904  ;;  %1924 = vrcp.f32 %v2661_v40 }
 0x3f9   : > { %v1314_v55 = vpop.f32.mrb[25].mxu0  ;;  %v2671_v50 = vmul.f32 %v1889_v9, %v1312_v44  ;;  %1926 = vrcp.f32 %v2663_v59 }
 0x3fa   : > { %v1315_v24 = vpop.f32.mrb[26].mxu0  ;;  %v1907_v55 = vpop.eup %1906  ;;  %1928 = vrcp.f32 %v2677_v5 }
 0x3fb   : > { %v2673_v22 = vmul.f32 %v1891_v6, %v1315_v24  ;;  %v1317_v2 = vpop.f32.mrb[27].mxu0  ;;  %1930 = vrcp.f32 %v2679_v62  ;;  %v1181_v5 = vpop.xlane.xlu0 %1180 }
 0x3fd   : > { %v1443_v45 = vpack.c.bf16 %v2673_v22, %v2671_v50 }
 0x3ff   : > { %v1478_v40 = vsel %vm556_vm2, %v1443_v45, 0 }
 0x400   : > { %v1320_v14 = vpop.f32.mrb[28].mxu0 }
 0x401   : > { %v1322_v46 = vpop.f32.mrb[29].mxu0  ;;  %v2681_v43 = vmul.f32 %v1893_v54, %v1320_v14 }
 0x402   : > { %v1323_v13 = vpop.f32.mrb[30].mxu0  ;;  %v1909_v46 = vpop.eup %1908 }
 0x403   : > { %v2683_v56 = vmul.f32 %v1895_v17, %v1323_v13  ;;  %v1325_v7 = vpop.f32.mrb[31].mxu0  ;;  %v1911_v13 = vpop.eup %1910 }
 0x404   : > { %v1913_v52 = vpop.eup %1912 }
 0x405   : > { %v1444_v58 = vpack.c.bf16 %v2683_v56, %v2681_v43  ;;  %v1915_v61 = vpop.eup %1914 }
 0x406   : > { %v1917_v51 = vpop.eup %1916 }
 0x407   : > { %v1919_v35 = vpop.eup %1918  ;;  %v1481_v50 = vsel %vm556_vm2, %v1444_v58, 0 }
 0x408   : > { %v1328_v37 = vpop.f32.mrb[32].mxu0  ;;  %v1921_v34 = vpop.eup %1920 }
 0x409   : > { %v1330_v20 = vpop.f32.mrb[33].mxu0  ;;  %v2687_v49 = vmul.f32 %v1897_v19, %v1328_v37  ;;  %v1923_v31 = vpop.eup %1922 }
 0x40a   : > { %v1331_v28 = vpop.f32.mrb[34].mxu0  ;;  %v1925_v10 = vpop.eup %1924 }
 0x40b   : > { %v2689_v23 = vmul.f32 %v1899_v36, %v1331_v28  ;;  %v1333_v0 = vpop.f32.mrb[35].mxu0  ;;  %v1927_v53 = vpop.eup %1926 }
 0x40c   : > { %v1929_v45 = vpop.eup %1928 }
 0x40d   : > { %v1445_v47 = vpack.c.bf16 %v2689_v23, %v2687_v49  ;;  %v1936_v23 = vld [vmem:[%s2040_s14] sm:$0xf] }
 0x40f   : > { %v1484_v43 = vsel %vm556_vm2, %v1445_v47, 0  ;;  %v1554_v47 = vunpack.c.l.bf16 %v1936_v23 }
 0x410   : > { %v1336_v27 = vpop.f32.mrb[36].mxu0 }
 0x411   : > { %v1338_v38 = vpop.f32.mrb[37].mxu0  ;;  %v2695_v42 = vmul.f32 %v1901_v32, %v1336_v27 }
 0x412   : > { %v1339_v11 = vpop.f32.mrb[38].mxu0 }
 0x413   : > { %v2697_v25 = vmul.f32 %v1903_v30, %v1339_v11  ;;  %v1341_v44 = vpop.f32.mrb[39].mxu0 }
 0x415   : > { %v1446_v9 = vpack.c.bf16 %v2697_v25, %v2695_v42 }
 0x417   : > { %v1487_v49 = vsel %vm556_vm2, %v1446_v9, 0 }
 0x418   : > { %v1344_v41 = vpop.f32.mrb[40].mxu0 }
 0x419   : > { %v1346_v15 = vpop.f32.mrb[41].mxu0  ;;  %v1423_v24 = vmul.f32 %v1905_v60, %v1344_v41 }
 0x41a   : > { %v1347_v6 = vpop.f32.mrb[42].mxu0 }
 0x41b   : > { %v1424_v2 = vmul.f32 %v1907_v55, %v1347_v6  ;;  %v1349_v14 = vpop.f32.mrb[43].mxu0 }
 0x41d   : > { %v1447_v54 = vpack.c.bf16 %v1424_v2, %v1423_v24 }
 0x41f   : > { %1705 = vmatprep.subr.msk.bf16.mxu1 %vm556_vm2, %v1447_v54 }
 0x420   : > { %v1352_v57 = vpop.f32.mrb[44].mxu0  ;;  %1688 = vmatpush3.bf16.xpose.msra.mxu1 %v1466_v26  ;;  %v1178_v26 = vpop.xlane.xlu1 %1177 }
 0x421   : > { %v1354_v17 = vpop.f32.mrb[45].mxu0  ;;  %v1425_v21 = vmul.f32 %v1909_v46, %v1352_v57  ;;  %1932 = vrcp.f32 %v1178_v26  ;;  %v1931_v46 = vpop.eup %1930 }
 0x422   : > { %v1355_v7 = vpop.f32.mrb[46].mxu0  ;;  %1934 = vrcp.f32 %v1181_v5 }
 0x423   : > { %v1426_v39 = vmul.f32 %v1911_v13, %v1355_v7  ;;  %v1357_v37 = vpop.f32.mrb[47].mxu0 }
 0x425   : > { %v1448_v19 = vpack.c.bf16 %v1426_v39, %v1425_v21 }
 0x427   : > { %1706 = vmatprep.subr.msk.bf16.mxu1 %vm556_vm2, %v1448_v19 }
 0x428   : > { %v1360_v8 = vpop.f32.mrb[48].mxu0  ;;  %1690 = vmatpush3.bf16.xpose.msra.mxu1 %v1469_v12 }
 0x429   : > { %v1362_v33 = vpop.f32.mrb[49].mxu0  ;;  %v1427_v36 = vmul.f32 %v1913_v52, %v1360_v8 }
 0x42a   : > { %v1363_v20 = vpop.f32.mrb[50].mxu0 }
 0x42b   : > { %v1428_v28 = vmul.f32 %v1915_v61, %v1363_v20  ;;  %v1365_v0 = vpop.f32.mrb[51].mxu0  ;;  %v1933_v58 = vpop.eup %1932 }
 0x42c   : > { %v1935_v19 = vpop.eup %1934  ;;  %v1460_v20 = vpop.permute.xlu1 %1459 }
 0x42d   : > { %v1449_v27 = vpack.c.bf16 %v1428_v28, %v1427_v36  ;;  %v1556_v28 = vcombine.high %v1554_v47, %v1554_v47 }
 0x42f   : > { %1707 = vmatprep.subr.msk.bf16.mxu1 %vm556_vm2, %v1449_v27 }
 0x430   : > { %v1368_v4 = vpop.f32.mrb[52].mxu0  ;;  %1692 = vmatpush3.bf16.xpose.msra.mxu1 %v1472_v3 }
 0x431   : > { %v1370_v48 = vpop.f32.mrb[53].mxu0  ;;  %v1429_v38 = vmul.f32 %v1917_v51, %v1368_v4 }
 0x432   : > { %v1371_v32 = vpop.f32.mrb[54].mxu0 }
 0x433   : > { %v1430_v30 = vmul.f32 %v1919_v35, %v1371_v32  ;;  %v1373_v11 = vpop.f32.mrb[55].mxu0 }
 0x435   : > { %v1450_v44 = vpack.c.bf16 %v1430_v30, %v1429_v38 }
 0x437   : > { %1708 = vmatprep.subr.msk.bf16.mxu1 %vm556_vm2, %v1450_v44 }
 0x438   : > { %v1376_v18 = vpop.f32.mrb[56].mxu0  ;;  %1694 = vmatpush3.bf16.xpose.msra.mxu1 %v1475_v1 }
 0x439   : > { %v1378_v29 = vpop.f32.mrb[57].mxu0  ;;  %v1431_v60 = vmul.f32 %v1921_v34, %v1376_v18 }
 0x43a   : > { %v1379_v41 = vpop.f32.mrb[58].mxu0 }
 0x43b   : > { %v1432_v15 = vmul.f32 %v1923_v31, %v1379_v41  ;;  %v1381_v55 = vpop.f32.mrb[59].mxu0 }
 0x43d   : > { %v1451_v6 = vpack.c.bf16 %v1432_v15, %v1431_v60 }
 0x43f   : > { %1709 = vmatprep.subr.msk.bf16.mxu1 %vm556_vm2, %v1451_v6 }
 0x440   : > { %v1384_v59 = vpop.f32.mrb[60].mxu0  ;;  %1696 = vmatpush3.bf16.xpose.msra.mxu1 %v1478_v40 }
 0x441   : > { %v1386_v16 = vpop.f32.mrb[61].mxu0  ;;  %v1433_v2 = vmul.f32 %v1925_v10, %v1384_v59 }
 0x442   : > { %v1387_v24 = vpop.f32.mrb[62].mxu0 }
 0x443   : > { %v1434_v14 = vmul.f32 %v1927_v53, %v1387_v24  ;;  %v1389_v54 = vpop.f32.mrb[63].mxu0 }
 0x445   : > { %v1452_v57 = vpack.c.bf16 %v1434_v14, %v1433_v2 }
 0x447   : > { %1710 = vmatprep.subr.msk.bf16.mxu1 %vm556_vm2, %v1452_v57 }
 0x448   : > { %v1392_v22 = vpop.f32.mrb[64].mxu0  ;;  %1698 = vmatpush3.bf16.xpose.msra.mxu1 %v1481_v50 }
 0x449   : > { %v1394_v62 = vpop.f32.mrb[65].mxu0  ;;  %v1435_v13 = vmul.f32 %v1929_v45, %v1392_v22 }
 0x44a   : > { %v1395_v17 = vpop.f32.mrb[66].mxu0 }
 0x44b   : > { %v1436_v7 = vmul.f32 %v1931_v46, %v1395_v17  ;;  %v1397_v21 = vpop.f32.mrb[67].mxu0 }
 0x44d   : > { %v1453_v39 = vpack.c.bf16 %v1436_v7, %v1435_v13 }
 0x44f   : > { %1711 = vmatprep.subr.msk.bf16.mxu1 %vm556_vm2, %v1453_v39 }
 0x450   : > { %v1400_v56 = vpop.f32.mrb[68].mxu0  ;;  %1700 = vmatpush3.bf16.xpose.msra.mxu1 %v1484_v43 }
 0x451   : > { %v1402_v37 = vpop.f32.mrb[69].mxu0  ;;  %v1437_v8 = vmul.f32 %v1933_v58, %v1400_v56 }
 0x452   : > { %v1403_v12 = vpop.f32.mrb[70].mxu0 }
 0x453   : > { %v1438_v52 = vmul.f32 %v1935_v19, %v1403_v12  ;;  %v1405_v33 = vpop.f32.mrb[71].mxu0 }
 0x455   : > { %v1454_v61 = vpack.c.bf16 %v1438_v52, %v1437_v8 }
 0x457   : > { %1712 = vmatprep.subr.msk.bf16.mxu1 %vm556_vm2, %v1454_v61 }
 0x458   : > { %1702 = vmatpush3.bf16.xpose.msra.mxu1 %v1487_v49 }
 0x45f   : > { %1704 = vmatmul.mubr.msk.bf16.vlgmr.msra.gmra.mrb[68].mxu1 %vm556_vm2, %v2643_v63 }
 0x532   : > { %v1547_v36 = vpop.f32.mrb[68].mxu1 }
 0x533   : > { %v1548_v0 = vadd.f32 %v1547_v36, %v1460_v20  ;;  %v1549_v27 = vpop.f32.mrb[69].mxu1 }
 0x534   : > { %v1550_v3 = vadd.f32 %v1549_v27, %v1460_v20  ;;  %v1551_v4 = vpop.f32.mrb[70].mxu1 }
 0x535   : > { %v1558_v51 = vadd.f32 %v1554_v47, %v1548_v0  ;;  %v1552_v48 = vpop.f32.mrb[71].mxu1 }
 0x536   : > { %v1559_v35 = vadd.f32 %v1556_v28, %v1550_v3 }
 0x538   : > { %v1562_v42 = vcombine.low %v1558_v51, %v1559_v35 }
 0x53a   : > { %1564 = vst [vmem:[%s300_s16] sm:$0xff] %v1562_v42 }
 0x53b PF: > { %s17_s26 = sadd.s32 1, %s1960_s26   ;;  %s2828_s24 = smov %s1956_s25 }
 0x53c   : > { %p14_p5 = scmp.ge.s32.totalorder %s17_s26, 4   ;;  %s2829_s25 = smov %s2831_s27 }
 0x53e   :  { %16 = sbr.rel (!%p14_p5) target bundleno = 2 (0x2), region = 83 }

</bundles_post_ra>
